<compile_context>
chip_gen: v6e
topology: v6e:2x2x1
jax: 0.10.0
libtpu: 0.0.40
codegen_flags: <defaults>
</compile_context>

<pallas_src>
import jax
import jax.numpy as jnp
from jax import lax
from jax.experimental import pallas as pl
from jax.experimental.pallas import tpu as pltpu


# ----------------------------------------------------------------------------
# helpers
# ----------------------------------------------------------------------------
def _full_spec(shape):
    nd = len(shape)
    return pl.BlockSpec(shape, lambda *_: (0,) * nd)


def _choose_node_tile(n_nodes, batch):
    """Rows per grid step = node_tile * batch.  Prefer >=2 grid steps (v7x has
    two TensorCores) with an 8-sublane-aligned row tile; fall back to a single
    full tile (full-array blocks are exempt from the (8,128) alignment rule)."""
    best = None
    for nt in range(n_nodes, 0, -1):
        if n_nodes % nt:
            continue
        rows = nt * batch
        if rows % 8 != 0 or rows > 512:
            continue
        if best is None:
            best = nt                      # largest aligned tile
        if n_nodes // nt >= 2:
            return nt                      # first aligned tile with >=2 steps
    return best if best is not None else n_nodes


# ----------------------------------------------------------------------------
# Kernel: (folded time-proj + folded GCN contrib) -> GRU1 -> GRU2
#         -> last timestep -> lane-padded dense head.
#
#   x_ref   : (S, tile, F_time)  raw time features, node-major rows (f32)
#   c1_ref  : (node_tile, 3U)    per-node layer-1 gate offsets (f32)
#   weff    : (F_time, 3U)       w_time @ w_ih1[:H]            (bf16)
#   whh1    : (U, 3U)            layer-1 recurrent weights      (bf16)
#   w2      : (2U, 4U)           fused layer-2 weights          (bf16)
#   b1hn    : (1, U)             b_hh1 of the n gate (stays under r*)
#   b2      : (1, 4U)            [b2_r, b2_z, b2_in, b2_hn] (r/z pre-summed)
#   wd/bd   : (U, P_pad), (1, P_pad)  lane-padded dense head (wd bf16)
#   gi_ref  : VMEM scratch (S, tile, 3U) for the hoisted input matmul
# ----------------------------------------------------------------------------
def _gru_dense_kernel(x_ref, c1_ref, weff_ref, whh1_ref, w2_ref,
                      b1hn_ref, b2_ref, wd_ref, bd_ref, o_ref, gi_ref):
    seq, tile, ft = x_ref.shape
    u = whh1_ref.shape[0]
    u3 = 3 * u
    bf16 = jnp.bfloat16

    # per-node gate offsets broadcast over batch (rows are node-major)
    node_tile = c1_ref.shape[0]
    b_rep = tile // node_tile
    c1_rows = jnp.broadcast_to(c1_ref[...][:, None, :],
                               (node_tile, b_rep, u3)).reshape(tile, u3)

    # hoisted layer-1 input-to-hidden matmul: ONE MXU op for all gates/steps
    x_all = x_ref[...].reshape(seq * tile, ft).astype(bf16)
    gi = jnp.dot(x_all, weff_ref[...], preferred_element_type=jnp.float32)
    gi_ref[...] = gi.reshape(seq, tile, u3) + c1_rows[None, :, :]

    # hoisted bias broadcasts (emitted once, not per unrolled step)
    b1hn = jnp.broadcast_to(b1hn_ref[...], (tile, u))
    b2p = jnp.broadcast_to(b2_ref[...], (tile, 4 * u))

    whh1 = whh1_ref[...]                   # bf16 (U, 3U)
    w2 = w2_ref[...]                       # bf16 (2U, 4U)

    def step(t, carry):
        h1, h2 = carry                                      # f32 (tile, U)
        gi_t = gi_ref[t]                                    # f32 (tile, 3U)
        # ----- GRU layer 1: single recurrent matmul, gates packed 96-wide ---
        gh1 = jnp.dot(h1.astype(bf16), whh1,
                      preferred_element_type=jnp.float32)
        rz1 = jax.nn.sigmoid(gi_t[:, :2 * u] + gh1[:, :2 * u])
        r1, z1 = rz1[:, :u], rz1[:, u:]
        n1 = jnp.tanh(gi_t[:, 2 * u:] + r1 * (gh1[:, 2 * u:] + b1hn))
        h1 = (1.0 - z1) * n1 + z1 * h1
        # ----- GRU layer 2: both input paths in ONE (tile,2U)@(2U,4U) matmul
        hcat = jnp.concatenate([h1, h2], axis=-1).astype(bf16)
        g2 = jnp.dot(hcat, w2, preferred_element_type=jnp.float32) + b2p
        rz2 = jax.nn.sigmoid(g2[:, :2 * u])
        r2, z2 = rz2[:, :u], rz2[:, u:]
        n2 = jnp.tanh(g2[:, 2 * u:3 * u] + r2 * g2[:, 3 * u:])
        h2 = (1.0 - z2) * n2 + z2 * h2
        return h1, h2

    h0 = jnp.zeros((tile, u), jnp.float32)
    if seq <= 16:
        # short sequence: unroll at trace time (LLO scheduler visibility);
        # per-step reads from the VMEM scratch keep live ranges bounded.
        carry = (h0, h0)
        for t in range(seq):
            carry = step(t, carry)
        h1, h2 = carry
    else:
        h1, h2 = lax.fori_loop(0, seq, step, (h0, h0))

    # lane-dense (P padded to 128) dense-head store
    o_ref[...] = (jnp.dot(h2.astype(bf16), wd_ref[...],
                          preferred_element_type=jnp.float32) + bd_ref[...])


def gru_dense_pallas(x_rows, c1, w_eff, whh1, w2_big, b1hn, b2_pack,
                     wd_pad, bd_pad, *, batch):
    s, bn, f = x_rows.shape
    n_nodes = c1.shape[0]
    u = whh1.shape[0]
    u3 = 3 * u
    p_pad = wd_pad.shape[1]

    node_tile = _choose_node_tile(n_nodes, batch)
    tile = node_tile * batch
    grid = (n_nodes // node_tile,)

    weights = (w_eff, whh1, w2_big, b1hn, b2_pack, wd_pad, bd_pad)
    in_specs = [pl.BlockSpec((s, tile, f), lambda i: (0, i, 0)),
                pl.BlockSpec((node_tile, u3), lambda i: (i, 0))]
    in_specs += [_full_spec(w.shape) for w in weights]

    return pl.pallas_call(
        _gru_dense_kernel,
        out_shape=jax.ShapeDtypeStruct((bn, p_pad), jnp.float32),
        grid=grid,
        in_specs=in_specs,
        out_specs=pl.BlockSpec((tile, p_pad), lambda i: (i, 0)),
        scratch_shapes=[pltpu.VMEM((s, tile, u3), jnp.float32)],
        compiler_params=pltpu.CompilerParams(
            dimension_semantics=("parallel",)),
    )(x_rows, c1, *weights)


# ----------------------------------------------------------------------------
# TGCN forward: adjacency norm + GCN + weight folding in plain JAX (tiny),
# the hot sequential path (GRU1+GRU2+dense head) in the Pallas kernel above.
# ----------------------------------------------------------------------------
def tgcn_forward(x_dict, params):
    flows = x_dict['features']['station_flows']            # (B, S, N, Ff)
    B, S, N, _ = flows.shape
    H = params['w_gcn1'].shape[1]
    U = params['w_hh1'].shape[0]
    P = params['w_dense'].shape[1]
    f32, bf16 = jnp.float32, jnp.bfloat16

    # dense normalized adjacency matching torch_geometric gcn_norm:
    # scatter-add edges, add self-loops ONLY where missing, D^-1/2 A D^-1/2.
    edge_index = x_dict['edge_indices'][
        ('station', 'adjacent_to', 'station')][0]           # (2, E)
    src, dst = edge_index[0], edge_index[1]
    adj = jnp.zeros((N, N), f32).at[dst, src].add(1.0)
    diag = jnp.diagonal(adj)
    adj = adj + jnp.diag(jnp.where(diag > 0, 0.0, 1.0))
    deg = adj.sum(axis=1)
    dinv = jnp.where(deg > 0, lax.rsqrt(deg), 0.0)
    a_norm = dinv[:, None] * adj * dinv[None, :]

    # static branch — intentionally uses only batch element 0, exactly like the
    # reference module.  No ReLU after the projection (module quirk: the ReLU
    # was passed as Linear's bias argument).  Plain JAX: a handful of <=(N,H)
    # matmuls; a separate pallas_call dispatch would cost more than the math.
    static = jnp.concatenate([x_dict['features']['station_poi'][0],
                              x_dict['features']['census_zone'][0]], axis=-1)
    h = static @ params['w_static'] + params['b_static']
    h = jnp.maximum(a_norm @ (h @ params['w_gcn1']) + params['b_gcn1'], 0.0)
    gcn_out = jnp.maximum(a_norm @ (h @ params['w_gcn2'])
                          + params['b_gcn2'], 0.0)           # (N, H)

    # -------- fold the time projection + GCN contribution into GRU1 ---------
    w_ih1 = params['w_ih1']                 # (2H, 3U), gate order r, z, n
    w_ih1_t, w_ih1_s = w_ih1[:H], w_ih1[H:]
    w_eff = (params['w_time'] @ w_ih1_t).astype(bf16)        # (F_time, 3U)

    # per-node additive term of layer-1 gi (independent of timestep)
    c1 = gcn_out @ w_ih1_s + params['b_time'] @ w_ih1_t + params['b_ih1']
    bhh1 = params['b_hh1']                                   # (1, 3U)
    c1 = c1.at[:, :2 * U].add(bhh1[:, :2 * U])               # fold b_hh1 (r,z)
    b1hn = bhh1[:, 2 * U:]                                   # (1, U); under r*

    # layer-2: single (2U,4U) weight so both input paths fuse into one matmul:
    # columns = [gi_r+gh_r, gi_z+gh_z, gi_n, gh_n]
    wih2, whh2 = params['w_ih2'], params['w_hh2']            # (U, 3U) each
    w2_big = jnp.zeros((2 * U, 4 * U), f32)
    w2_big = w2_big.at[:U, :2 * U].set(wih2[:, :2 * U])
    w2_big = w2_big.at[U:, :2 * U].set(whh2[:, :2 * U])
    w2_big = w2_big.at[:U, 2 * U:3 * U].set(wih2[:, 2 * U:])
    w2_big = w2_big.at[U:, 3 * U:].set(whh2[:, 2 * U:])
    b_ih2, b_hh2 = params['b_ih2'], params['b_hh2']
    b2_pack = jnp.concatenate([b_ih2[:, :2 * U] + b_hh2[:, :2 * U],
                               b_ih2[:, 2 * U:], b_hh2[:, 2 * U:]], axis=1)

    # lane-pad the dense head so the output store is lane-dense
    P_pad = ((P + 127) // 128) * 128
    wd_pad = (jnp.zeros((U, P_pad), f32)
              .at[:, :P].set(params['w_dense']).astype(bf16))
    bd_pad = jnp.zeros((1, P_pad), f32).at[:, :P].set(params['b_dense'])

    # raw time features, node-major rows (row = node*B + b): (S, N*B, F_time)
    time_feat = jnp.concatenate([flows,
                                 x_dict['features']['hour_of_day'],
                                 x_dict['features']['day_of_week'],
                                 x_dict['features']['weather']], axis=-1)
    ft = time_feat.shape[-1]
    x_rows = jnp.transpose(time_feat, (1, 2, 0, 3)).reshape(S, N * B, ft)

    out = gru_dense_pallas(x_rows, c1, w_eff, params['w_hh1'].astype(bf16),
                           w2_big.astype(bf16), b1hn, b2_pack, wd_pad, bd_pad,
                           batch=B)                          # (N*B, P_pad)
    # node-major rows back to (B, N, P)
    return jnp.transpose(out[:, :P].reshape(N, B, P), (1, 0, 2))


# ----------------------------------------------------------------------------
# deterministic parameter init + example inputs
# ----------------------------------------------------------------------------
def init_params(key, f_static, f_time, hidden_channels, hidden_units_gru,
                prediction_length):
    H, U, P = hidden_channels, hidden_units_gru, prediction_length
    ks = jax.random.split(key, 20)
    s = 0.1

    def w(k, shape):
        return jax.random.normal(k, shape, jnp.float32) * s

    return dict(
        w_static=w(ks[0], (f_static, H)), b_static=w(ks[1], (1, H)),
        w_gcn1=w(ks[2], (H, H)),          b_gcn1=w(ks[3], (1, H)),
        w_gcn2=w(ks[4], (H, H)),          b_gcn2=w(ks[5], (1, H)),
        w_time=w(ks[6], (f_time, H)),     b_time=w(ks[7], (1, H)),
        # GRU1: input 2H -> U  (gate order r, z, n, pre-transposed)
        w_ih1=w(ks[8], (2 * H, 3 * U)),   w_hh1=w(ks[9], (U, 3 * U)),
        b_ih1=w(ks[10], (1, 3 * U)),      b_hh1=w(ks[11], (1, 3 * U)),
        # GRU2: U -> U
        w_ih2=w(ks[12], (U, 3 * U)),      w_hh2=w(ks[13], (U, 3 * U)),
        b_ih2=w(ks[14], (1, 3 * U)),      b_hh2=w(ks[15], (1, 3 * U)),
        w_dense=w(ks[16], (U, P)),        b_dense=w(ks[17], (1, P)),
    )


if __name__ == "__main__":
    # small but representative shapes
    B, S, N = 2, 8, 16
    F_FLOW, F_HOUR, F_DOW, F_WEATHER = 3, 1, 1, 3         # F_time = 8
    F_POI, F_CENSUS = 5, 3                                 # F_static = 8
    H, U, P = 32, 32, 4                                    # hidden, gru, pred_len
    E = 40

    key = jax.random.PRNGKey(0)
    kf, kh, kd, kw, kp, kc, ke, kparam = jax.random.split(key, 8)

    x_dict = {
        'features': {
            'station_flows': jax.random.normal(kf, (B, S, N, F_FLOW), jnp.float32),
            'hour_of_day':   jax.random.normal(kh, (B, S, N, F_HOUR), jnp.float32),
            'day_of_week':   jax.random.normal(kd, (B, S, N, F_DOW), jnp.float32),
            'weather':       jax.random.normal(kw, (B, S, N, F_WEATHER), jnp.float32),
            'station_poi':   jax.random.normal(kp, (B, N, F_POI), jnp.float32),
            'census_zone':   jax.random.normal(kc, (B, N, F_CENSUS), jnp.float32),
        },
        'edge_indices': {
            ('station', 'adjacent_to', 'station'):
                jax.random.randint(ke, (1, 2, E), 0, N, jnp.int32),
        },
    }

    params = init_params(kparam, F_POI + F_CENSUS,
                         F_FLOW + F_HOUR + F_DOW + F_WEATHER, H, U, P)

    out = tgcn_forward(x_dict, params)
    out = jax.block_until_ready(out)
    assert out.shape == (B, N, P)
    assert jnp.all(jnp.isfinite(out))
    print("KERNEL_OK")
</pallas_src>

<mosaic_0001>
module attributes {stable_mosaic.version = 11 : i64} {
  func.func @_gru_dense_kernel(%arg0: i32, %arg1: memref<8x16x8xf32, #tpu.memory_space<vmem>>, %arg2: memref<8x96xf32, #tpu.memory_space<vmem>>, %arg3: memref<8x96xbf16, #tpu.memory_space<vmem>>, %arg4: memref<32x96xbf16, #tpu.memory_space<vmem>>, %arg5: memref<64x128xbf16, #tpu.memory_space<vmem>>, %arg6: memref<1x32xf32, #tpu.memory_space<vmem>>, %arg7: memref<1x128xf32, #tpu.memory_space<vmem>>, %arg8: memref<32x128xbf16, #tpu.memory_space<vmem>>, %arg9: memref<1x128xf32, #tpu.memory_space<vmem>>, %arg10: memref<16x128xf32, #tpu.memory_space<vmem>>, %arg11: memref<8x16x96xf32, #tpu.memory_space<vmem>>) attributes {dimension_semantics = [#tpu.dimension_semantics<parallel>], iteration_bounds = array<i64: 2>, scalar_prefetch = 0 : i64, scratch_operands = 1 : i64, tpu.core_type = #tpu.core_type<tc>, window_params = [{transform_indices = @transform_0, window_bounds = array<i64: 8, 16, 8>}, {transform_indices = @transform_1, window_bounds = array<i64: 8, 96>}, {pipeline_mode = #tpu.pipeline_mode<synchronous>, transform_indices = @transform_2, window_bounds = array<i64: 8, 96>}, {pipeline_mode = #tpu.pipeline_mode<synchronous>, transform_indices = @transform_3, window_bounds = array<i64: 32, 96>}, {pipeline_mode = #tpu.pipeline_mode<synchronous>, transform_indices = @transform_4, window_bounds = array<i64: 64, 128>}, {pipeline_mode = #tpu.pipeline_mode<synchronous>, transform_indices = @transform_5, window_bounds = array<i64: 1, 32>}, {pipeline_mode = #tpu.pipeline_mode<synchronous>, transform_indices = @transform_6, window_bounds = array<i64: 1, 128>}, {pipeline_mode = #tpu.pipeline_mode<synchronous>, transform_indices = @transform_7, window_bounds = array<i64: 32, 128>}, {pipeline_mode = #tpu.pipeline_mode<synchronous>, transform_indices = @transform_8, window_bounds = array<i64: 1, 128>}, {transform_indices = @transform_9, window_bounds = array<i64: 16, 128>}]} {
    %c0 = arith.constant 0 : index
    %c0_0 = arith.constant 0 : index
    %0 = vector.load %arg2[%c0, %c0_0] : memref<8x96xf32, #tpu.memory_space<vmem>>, vector<8x96xf32>
    %1 = vector.shape_cast %0 : vector<8x96xf32> to vector<8x1x96xf32>
    %2 = vector.shape_cast %1 : vector<8x1x96xf32> to vector<8x1x96xf32>
    %3 = vector.broadcast %2 : vector<8x1x96xf32> to vector<8x2x96xf32>
    %4 = vector.shape_cast %3 : vector<8x2x96xf32> to vector<16x96xf32>
    %c0_1 = arith.constant 0 : index
    %c0_2 = arith.constant 0 : index
    %c0_3 = arith.constant 0 : index
    %5 = vector.load %arg1[%c0_1, %c0_2, %c0_3] : memref<8x16x8xf32, #tpu.memory_space<vmem>>, vector<8x16x8xf32>
    %6 = vector.shape_cast %5 : vector<8x16x8xf32> to vector<128x8xf32>
    %7 = arith.truncf %6 : vector<128x8xf32> to vector<128x8xbf16>
    %c0_4 = arith.constant 0 : index
    %c0_5 = arith.constant 0 : index
    %8 = vector.load %arg3[%c0_4, %c0_5] : memref<8x96xbf16, #tpu.memory_space<vmem>>, vector<8x96xbf16>
    %cst = arith.constant dense<0.000000e+00> : vector<128x96xf32>
    %9 = tpu.matmul %7, %8, %cst {dimension_numbers = #tpu.dot_dimension_numbers<[1], [0], [0], [1], [0, 0, 1, 1], [], []>} : vector<128x8xbf16>, vector<8x96xbf16>, vector<128x96xf32> -> vector<128x96xf32>
    %10 = vector.shape_cast %9 : vector<128x96xf32> to vector<8x16x96xf32>
    %11 = vector.shape_cast %4 : vector<16x96xf32> to vector<1x16x96xf32>
    %12 = vector.broadcast %11 : vector<1x16x96xf32> to vector<8x16x96xf32>
    %13 = arith.addf %10, %12 : vector<8x16x96xf32>
    %c0_6 = arith.constant 0 : index
    %c0_7 = arith.constant 0 : index
    %c0_8 = arith.constant 0 : index
    %14 = vector.load %arg11[%c0_6, %c0_7, %c0_8] : memref<8x16x96xf32, #tpu.memory_space<vmem>>, vector<8x16x96xf32>
    tpu.vector_store %arg11[%c0_6, %c0_7, %c0_8], %13 {strides = array<i32>} : memref<8x16x96xf32, #tpu.memory_space<vmem>>, vector<8x16x96xf32>,
    %c0_9 = arith.constant 0 : index
    %c0_10 = arith.constant 0 : index
    %15 = vector.load %arg6[%c0_9, %c0_10] : memref<1x32xf32, #tpu.memory_space<vmem>>, vector<1x32xf32>
    %16 = vector.shape_cast %15 : vector<1x32xf32> to vector<1x32xf32>
    %17 = vector.broadcast %16 : vector<1x32xf32> to vector<16x32xf32>
    %c0_11 = arith.constant 0 : index
    %c0_12 = arith.constant 0 : index
    %18 = vector.load %arg7[%c0_11, %c0_12] : memref<1x128xf32, #tpu.memory_space<vmem>>, vector<1x128xf32>
    %19 = vector.shape_cast %18 : vector<1x128xf32> to vector<1x128xf32>
    %20 = vector.broadcast %19 : vector<1x128xf32> to vector<16x128xf32>
    %c0_13 = arith.constant 0 : index
    %c0_14 = arith.constant 0 : index
    %21 = vector.load %arg4[%c0_13, %c0_14] : memref<32x96xbf16, #tpu.memory_space<vmem>>, vector<32x96xbf16>
    %c0_15 = arith.constant 0 : index
    %c0_16 = arith.constant 0 : index
    %22 = vector.load %arg5[%c0_15, %c0_16] : memref<64x128xbf16, #tpu.memory_space<vmem>>, vector<64x128xbf16>
    %cst_17 = arith.constant 0.000000e+00 : f32
    %23 = vector.broadcast %cst_17 : f32 to vector<16x32xf32>
    %c0_18 = arith.constant 0 : index
    %c0_19 = arith.constant 0 : index
    %c0_20 = arith.constant 0 : index
    %24 = vector.load %arg11[%c0_18, %c0_19, %c0_20] : memref<8x16x96xf32, #tpu.memory_space<vmem>>, vector<1x16x96xf32>
    %25 = vector.shape_cast %24 : vector<1x16x96xf32> to vector<16x96xf32>
    %26 = arith.truncf %23 : vector<16x32xf32> to vector<16x32xbf16>
    %cst_21 = arith.constant dense<0.000000e+00> : vector<16x96xf32>
    %27 = tpu.matmul %26, %21, %cst_21 {dimension_numbers = #tpu.dot_dimension_numbers<[1], [0], [0], [1], [0, 0, 1, 1], [], []>} : vector<16x32xbf16>, vector<32x96xbf16>, vector<16x96xf32> -> vector<16x96xf32>
    %28 = vector.extract_strided_slice %25 {offsets = [0, 0], sizes = [16, 64], strides = [1, 1]} : vector<16x96xf32> to vector<16x64xf32>
    %29 = vector.extract_strided_slice %27 {offsets = [0, 0], sizes = [16, 64], strides = [1, 1]} : vector<16x96xf32> to vector<16x64xf32>
    %30 = arith.addf %28, %29 : vector<16x64xf32>
    %31 = arith.negf %30 : vector<16x64xf32>
    %32 = math.exp %31 : vector<16x64xf32>
    %cst_22 = arith.constant 1.000000e+00 : f32
    %33 = vector.broadcast %cst_22 : f32 to vector<16x64xf32>
    %34 = arith.addf %33, %32 : vector<16x64xf32>
    %35 = arith.divf %33, %34 : vector<16x64xf32>
    %36 = vector.extract_strided_slice %35 {offsets = [0, 0], sizes = [16, 32], strides = [1, 1]} : vector<16x64xf32> to vector<16x32xf32>
    %37 = vector.extract_strided_slice %35 {offsets = [0, 32], sizes = [16, 32], strides = [1, 1]} : vector<16x64xf32> to vector<16x32xf32>
    %38 = vector.extract_strided_slice %25 {offsets = [0, 64], sizes = [16, 32], strides = [1, 1]} : vector<16x96xf32> to vector<16x32xf32>
    %39 = vector.extract_strided_slice %27 {offsets = [0, 64], sizes = [16, 32], strides = [1, 1]} : vector<16x96xf32> to vector<16x32xf32>
    %40 = arith.addf %39, %17 : vector<16x32xf32>
    %41 = arith.mulf %36, %40 : vector<16x32xf32>
    %42 = arith.addf %38, %41 : vector<16x32xf32>
    %43 = math.tanh %42 : vector<16x32xf32>
    %cst_23 = arith.constant 1.000000e+00 : f32
    %44 = vector.broadcast %cst_23 : f32 to vector<16x32xf32>
    %45 = arith.subf %44, %37 : vector<16x32xf32>
    %46 = arith.mulf %45, %43 : vector<16x32xf32>
    %47 = arith.mulf %37, %23 : vector<16x32xf32>
    %48 = arith.addf %46, %47 : vector<16x32xf32>
    %49 = tpu.concatenate %48, %23 in 1 : vector<16x32xf32>, vector<16x32xf32> -> vector<16x64xf32>
    %50 = arith.truncf %49 : vector<16x64xf32> to vector<16x64xbf16>
    %cst_24 = arith.constant dense<0.000000e+00> : vector<16x128xf32>
    %51 = tpu.matmul %50, %22, %cst_24 {dimension_numbers = #tpu.dot_dimension_numbers<[1], [0], [0], [1], [0, 0, 1, 1], [], []>} : vector<16x64xbf16>, vector<64x128xbf16>, vector<16x128xf32> -> vector<16x128xf32>
    %52 = arith.addf %51, %20 : vector<16x128xf32>
    %53 = vector.extract_strided_slice %52 {offsets = [0, 0], sizes = [16, 64], strides = [1, 1]} : vector<16x128xf32> to vector<16x64xf32>
    %54 = arith.negf %53 : vector<16x64xf32>
    %55 = math.exp %54 : vector<16x64xf32>
    %cst_25 = arith.constant 1.000000e+00 : f32
    %56 = vector.broadcast %cst_25 : f32 to vector<16x64xf32>
    %57 = arith.addf %56, %55 : vector<16x64xf32>
    %58 = arith.divf %56, %57 : vector<16x64xf32>
    %59 = vector.extract_strided_slice %58 {offsets = [0, 0], sizes = [16, 32], strides = [1, 1]} : vector<16x64xf32> to vector<16x32xf32>
    %60 = vector.extract_strided_slice %58 {offsets = [0, 32], sizes = [16, 32], strides = [1, 1]} : vector<16x64xf32> to vector<16x32xf32>
    %61 = vector.extract_strided_slice %52 {offsets = [0, 64], sizes = [16, 32], strides = [1, 1]} : vector<16x128xf32> to vector<16x32xf32>
    %62 = vector.extract_strided_slice %52 {offsets = [0, 96], sizes = [16, 32], strides = [1, 1]} : vector<16x128xf32> to vector<16x32xf32>
    %63 = arith.mulf %59, %62 : vector<16x32xf32>
    %64 = arith.addf %61, %63 : vector<16x32xf32>
    %65 = math.tanh %64 : vector<16x32xf32>
    %cst_26 = arith.constant 1.000000e+00 : f32
    %66 = vector.broadcast %cst_26 : f32 to vector<16x32xf32>
    %67 = arith.subf %66, %60 : vector<16x32xf32>
    %68 = arith.mulf %67, %65 : vector<16x32xf32>
    %69 = arith.mulf %60, %23 : vector<16x32xf32>
    %70 = arith.addf %68, %69 : vector<16x32xf32>
    %c1 = arith.constant 1 : index
    %c0_27 = arith.constant 0 : index
    %c0_28 = arith.constant 0 : index
    %71 = vector.load %arg11[%c1, %c0_27, %c0_28] : memref<8x16x96xf32, #tpu.memory_space<vmem>>, vector<1x16x96xf32>
    %72 = vector.shape_cast %71 : vector<1x16x96xf32> to vector<16x96xf32>
    %73 = arith.truncf %48 : vector<16x32xf32> to vector<16x32xbf16>
    %cst_29 = arith.constant dense<0.000000e+00> : vector<16x96xf32>
    %74 = tpu.matmul %73, %21, %cst_29 {dimension_numbers = #tpu.dot_dimension_numbers<[1], [0], [0], [1], [0, 0, 1, 1], [], []>} : vector<16x32xbf16>, vector<32x96xbf16>, vector<16x96xf32> -> vector<16x96xf32>
    %75 = vector.extract_strided_slice %72 {offsets = [0, 0], sizes = [16, 64], strides = [1, 1]} : vector<16x96xf32> to vector<16x64xf32>
    %76 = vector.extract_strided_slice %74 {offsets = [0, 0], sizes = [16, 64], strides = [1, 1]} : vector<16x96xf32> to vector<16x64xf32>
    %77 = arith.addf %75, %76 : vector<16x64xf32>
    %78 = arith.negf %77 : vector<16x64xf32>
    %79 = math.exp %78 : vector<16x64xf32>
    %cst_30 = arith.constant 1.000000e+00 : f32
    %80 = vector.broadcast %cst_30 : f32 to vector<16x64xf32>
    %81 = arith.addf %80, %79 : vector<16x64xf32>
    %82 = arith.divf %80, %81 : vector<16x64xf32>
    %83 = vector.extract_strided_slice %82 {offsets = [0, 0], sizes = [16, 32], strides = [1, 1]} : vector<16x64xf32> to vector<16x32xf32>
    %84 = vector.extract_strided_slice %82 {offsets = [0, 32], sizes = [16, 32], strides = [1, 1]} : vector<16x64xf32> to vector<16x32xf32>
    %85 = vector.extract_strided_slice %72 {offsets = [0, 64], sizes = [16, 32], strides = [1, 1]} : vector<16x96xf32> to vector<16x32xf32>
    %86 = vector.extract_strided_slice %74 {offsets = [0, 64], sizes = [16, 32], strides = [1, 1]} : vector<16x96xf32> to vector<16x32xf32>
    %87 = arith.addf %86, %17 : vector<16x32xf32>
    %88 = arith.mulf %83, %87 : vector<16x32xf32>
    %89 = arith.addf %85, %88 : vector<16x32xf32>
    %90 = math.tanh %89 : vector<16x32xf32>
    %cst_31 = arith.constant 1.000000e+00 : f32
    %91 = vector.broadcast %cst_31 : f32 to vector<16x32xf32>
    %92 = arith.subf %91, %84 : vector<16x32xf32>
    %93 = arith.mulf %92, %90 : vector<16x32xf32>
    %94 = arith.mulf %84, %48 : vector<16x32xf32>
    %95 = arith.addf %93, %94 : vector<16x32xf32>
    %96 = tpu.concatenate %95, %70 in 1 : vector<16x32xf32>, vector<16x32xf32> -> vector<16x64xf32>
    %97 = arith.truncf %96 : vector<16x64xf32> to vector<16x64xbf16>
    %cst_32 = arith.constant dense<0.000000e+00> : vector<16x128xf32>
    %98 = tpu.matmul %97, %22, %cst_32 {dimension_numbers = #tpu.dot_dimension_numbers<[1], [0], [0], [1], [0, 0, 1, 1], [], []>} : vector<16x64xbf16>, vector<64x128xbf16>, vector<16x128xf32> -> vector<16x128xf32>
    %99 = arith.addf %98, %20 : vector<16x128xf32>
    %100 = vector.extract_strided_slice %99 {offsets = [0, 0], sizes = [16, 64], strides = [1, 1]} : vector<16x128xf32> to vector<16x64xf32>
    %101 = arith.negf %100 : vector<16x64xf32>
    %102 = math.exp %101 : vector<16x64xf32>
    %cst_33 = arith.constant 1.000000e+00 : f32
    %103 = vector.broadcast %cst_33 : f32 to vector<16x64xf32>
    %104 = arith.addf %103, %102 : vector<16x64xf32>
    %105 = arith.divf %103, %104 : vector<16x64xf32>
    %106 = vector.extract_strided_slice %105 {offsets = [0, 0], sizes = [16, 32], strides = [1, 1]} : vector<16x64xf32> to vector<16x32xf32>
    %107 = vector.extract_strided_slice %105 {offsets = [0, 32], sizes = [16, 32], strides = [1, 1]} : vector<16x64xf32> to vector<16x32xf32>
    %108 = vector.extract_strided_slice %99 {offsets = [0, 64], sizes = [16, 32], strides = [1, 1]} : vector<16x128xf32> to vector<16x32xf32>
    %109 = vector.extract_strided_slice %99 {offsets = [0, 96], sizes = [16, 32], strides = [1, 1]} : vector<16x128xf32> to vector<16x32xf32>
    %110 = arith.mulf %106, %109 : vector<16x32xf32>
    %111 = arith.addf %108, %110 : vector<16x32xf32>
    %112 = math.tanh %111 : vector<16x32xf32>
    %cst_34 = arith.constant 1.000000e+00 : f32
    %113 = vector.broadcast %cst_34 : f32 to vector<16x32xf32>
    %114 = arith.subf %113, %107 : vector<16x32xf32>
    %115 = arith.mulf %114, %112 : vector<16x32xf32>
    %116 = arith.mulf %107, %70 : vector<16x32xf32>
    %117 = arith.addf %115, %116 : vector<16x32xf32>
    %c2 = arith.constant 2 : index
    %c0_35 = arith.constant 0 : index
    %c0_36 = arith.constant 0 : index
    %118 = vector.load %arg11[%c2, %c0_35, %c0_36] : memref<8x16x96xf32, #tpu.memory_space<vmem>>, vector<1x16x96xf32>
    %119 = vector.shape_cast %118 : vector<1x16x96xf32> to vector<16x96xf32>
    %120 = arith.truncf %95 : vector<16x32xf32> to vector<16x32xbf16>
    %cst_37 = arith.constant dense<0.000000e+00> : vector<16x96xf32>
    %121 = tpu.matmul %120, %21, %cst_37 {dimension_numbers = #tpu.dot_dimension_numbers<[1], [0], [0], [1], [0, 0, 1, 1], [], []>} : vector<16x32xbf16>, vector<32x96xbf16>, vector<16x96xf32> -> vector<16x96xf32>
    %122 = vector.extract_strided_slice %119 {offsets = [0, 0], sizes = [16, 64], strides = [1, 1]} : vector<16x96xf32> to vector<16x64xf32>
    %123 = vector.extract_strided_slice %121 {offsets = [0, 0], sizes = [16, 64], strides = [1, 1]} : vector<16x96xf32> to vector<16x64xf32>
    %124 = arith.addf %122, %123 : vector<16x64xf32>
    %125 = arith.negf %124 : vector<16x64xf32>
    %126 = math.exp %125 : vector<16x64xf32>
    %cst_38 = arith.constant 1.000000e+00 : f32
    %127 = vector.broadcast %cst_38 : f32 to vector<16x64xf32>
    %128 = arith.addf %127, %126 : vector<16x64xf32>
    %129 = arith.divf %127, %128 : vector<16x64xf32>
    %130 = vector.extract_strided_slice %129 {offsets = [0, 0], sizes = [16, 32], strides = [1, 1]} : vector<16x64xf32> to vector<16x32xf32>
    %131 = vector.extract_strided_slice %129 {offsets = [0, 32], sizes = [16, 32], strides = [1, 1]} : vector<16x64xf32> to vector<16x32xf32>
    %132 = vector.extract_strided_slice %119 {offsets = [0, 64], sizes = [16, 32], strides = [1, 1]} : vector<16x96xf32> to vector<16x32xf32>
    %133 = vector.extract_strided_slice %121 {offsets = [0, 64], sizes = [16, 32], strides = [1, 1]} : vector<16x96xf32> to vector<16x32xf32>
    %134 = arith.addf %133, %17 : vector<16x32xf32>
    %135 = arith.mulf %130, %134 : vector<16x32xf32>
    %136 = arith.addf %132, %135 : vector<16x32xf32>
    %137 = math.tanh %136 : vector<16x32xf32>
    %cst_39 = arith.constant 1.000000e+00 : f32
    %138 = vector.broadcast %cst_39 : f32 to vector<16x32xf32>
    %139 = arith.subf %138, %131 : vector<16x32xf32>
    %140 = arith.mulf %139, %137 : vector<16x32xf32>
    %141 = arith.mulf %131, %95 : vector<16x32xf32>
    %142 = arith.addf %140, %141 : vector<16x32xf32>
    %143 = tpu.concatenate %142, %117 in 1 : vector<16x32xf32>, vector<16x32xf32> -> vector<16x64xf32>
    %144 = arith.truncf %143 : vector<16x64xf32> to vector<16x64xbf16>
    %cst_40 = arith.constant dense<0.000000e+00> : vector<16x128xf32>
    %145 = tpu.matmul %144, %22, %cst_40 {dimension_numbers = #tpu.dot_dimension_numbers<[1], [0], [0], [1], [0, 0, 1, 1], [], []>} : vector<16x64xbf16>, vector<64x128xbf16>, vector<16x128xf32> -> vector<16x128xf32>
    %146 = arith.addf %145, %20 : vector<16x128xf32>
    %147 = vector.extract_strided_slice %146 {offsets = [0, 0], sizes = [16, 64], strides = [1, 1]} : vector<16x128xf32> to vector<16x64xf32>
    %148 = arith.negf %147 : vector<16x64xf32>
    %149 = math.exp %148 : vector<16x64xf32>
    %cst_41 = arith.constant 1.000000e+00 : f32
    %150 = vector.broadcast %cst_41 : f32 to vector<16x64xf32>
    %151 = arith.addf %150, %149 : vector<16x64xf32>
    %152 = arith.divf %150, %151 : vector<16x64xf32>
    %153 = vector.extract_strided_slice %152 {offsets = [0, 0], sizes = [16, 32], strides = [1, 1]} : vector<16x64xf32> to vector<16x32xf32>
    %154 = vector.extract_strided_slice %152 {offsets = [0, 32], sizes = [16, 32], strides = [1, 1]} : vector<16x64xf32> to vector<16x32xf32>
    %155 = vector.extract_strided_slice %146 {offsets = [0, 64], sizes = [16, 32], strides = [1, 1]} : vector<16x128xf32> to vector<16x32xf32>
    %156 = vector.extract_strided_slice %146 {offsets = [0, 96], sizes = [16, 32], strides = [1, 1]} : vector<16x128xf32> to vector<16x32xf32>
    %157 = arith.mulf %153, %156 : vector<16x32xf32>
    %158 = arith.addf %155, %157 : vector<16x32xf32>
    %159 = math.tanh %158 : vector<16x32xf32>
    %cst_42 = arith.constant 1.000000e+00 : f32
    %160 = vector.broadcast %cst_42 : f32 to vector<16x32xf32>
    %161 = arith.subf %160, %154 : vector<16x32xf32>
    %162 = arith.mulf %161, %159 : vector<16x32xf32>
    %163 = arith.mulf %154, %117 : vector<16x32xf32>
    %164 = arith.addf %162, %163 : vector<16x32xf32>
    %c3 = arith.constant 3 : index
    %c0_43 = arith.constant 0 : index
    %c0_44 = arith.constant 0 : index
    %165 = vector.load %arg11[%c3, %c0_43, %c0_44] : memref<8x16x96xf32, #tpu.memory_space<vmem>>, vector<1x16x96xf32>
    %166 = vector.shape_cast %165 : vector<1x16x96xf32> to vector<16x96xf32>
    %167 = arith.truncf %142 : vector<16x32xf32> to vector<16x32xbf16>
    %cst_45 = arith.constant dense<0.000000e+00> : vector<16x96xf32>
    %168 = tpu.matmul %167, %21, %cst_45 {dimension_numbers = #tpu.dot_dimension_numbers<[1], [0], [0], [1], [0, 0, 1, 1], [], []>} : vector<16x32xbf16>, vector<32x96xbf16>, vector<16x96xf32> -> vector<16x96xf32>
    %169 = vector.extract_strided_slice %166 {offsets = [0, 0], sizes = [16, 64], strides = [1, 1]} : vector<16x96xf32> to vector<16x64xf32>
    %170 = vector.extract_strided_slice %168 {offsets = [0, 0], sizes = [16, 64], strides = [1, 1]} : vector<16x96xf32> to vector<16x64xf32>
    %171 = arith.addf %169, %170 : vector<16x64xf32>
    %172 = arith.negf %171 : vector<16x64xf32>
    %173 = math.exp %172 : vector<16x64xf32>
    %cst_46 = arith.constant 1.000000e+00 : f32
    %174 = vector.broadcast %cst_46 : f32 to vector<16x64xf32>
    %175 = arith.addf %174, %173 : vector<16x64xf32>
    %176 = arith.divf %174, %175 : vector<16x64xf32>
    %177 = vector.extract_strided_slice %176 {offsets = [0, 0], sizes = [16, 32], strides = [1, 1]} : vector<16x64xf32> to vector<16x32xf32>
    %178 = vector.extract_strided_slice %176 {offsets = [0, 32], sizes = [16, 32], strides = [1, 1]} : vector<16x64xf32> to vector<16x32xf32>
    %179 = vector.extract_strided_slice %166 {offsets = [0, 64], sizes = [16, 32], strides = [1, 1]} : vector<16x96xf32> to vector<16x32xf32>
    %180 = vector.extract_strided_slice %168 {offsets = [0, 64], sizes = [16, 32], strides = [1, 1]} : vector<16x96xf32> to vector<16x32xf32>
    %181 = arith.addf %180, %17 : vector<16x32xf32>
    %182 = arith.mulf %177, %181 : vector<16x32xf32>
    %183 = arith.addf %179, %182 : vector<16x32xf32>
    %184 = math.tanh %183 : vector<16x32xf32>
    %cst_47 = arith.constant 1.000000e+00 : f32
    %185 = vector.broadcast %cst_47 : f32 to vector<16x32xf32>
    %186 = arith.subf %185, %178 : vector<16x32xf32>
    %187 = arith.mulf %186, %184 : vector<16x32xf32>
    %188 = arith.mulf %178, %142 : vector<16x32xf32>
    %189 = arith.addf %187, %188 : vector<16x32xf32>
    %190 = tpu.concatenate %189, %164 in 1 : vector<16x32xf32>, vector<16x32xf32> -> vector<16x64xf32>
    %191 = arith.truncf %190 : vector<16x64xf32> to vector<16x64xbf16>
    %cst_48 = arith.constant dense<0.000000e+00> : vector<16x128xf32>
    %192 = tpu.matmul %191, %22, %cst_48 {dimension_numbers = #tpu.dot_dimension_numbers<[1], [0], [0], [1], [0, 0, 1, 1], [], []>} : vector<16x64xbf16>, vector<64x128xbf16>, vector<16x128xf32> -> vector<16x128xf32>
    %193 = arith.addf %192, %20 : vector<16x128xf32>
    %194 = vector.extract_strided_slice %193 {offsets = [0, 0], sizes = [16, 64], strides = [1, 1]} : vector<16x128xf32> to vector<16x64xf32>
    %195 = arith.negf %194 : vector<16x64xf32>
    %196 = math.exp %195 : vector<16x64xf32>
    %cst_49 = arith.constant 1.000000e+00 : f32
    %197 = vector.broadcast %cst_49 : f32 to vector<16x64xf32>
    %198 = arith.addf %197, %196 : vector<16x64xf32>
    %199 = arith.divf %197, %198 : vector<16x64xf32>
    %200 = vector.extract_strided_slice %199 {offsets = [0, 0], sizes = [16, 32], strides = [1, 1]} : vector<16x64xf32> to vector<16x32xf32>
    %201 = vector.extract_strided_slice %199 {offsets = [0, 32], sizes = [16, 32], strides = [1, 1]} : vector<16x64xf32> to vector<16x32xf32>
    %202 = vector.extract_strided_slice %193 {offsets = [0, 64], sizes = [16, 32], strides = [1, 1]} : vector<16x128xf32> to vector<16x32xf32>
    %203 = vector.extract_strided_slice %193 {offsets = [0, 96], sizes = [16, 32], strides = [1, 1]} : vector<16x128xf32> to vector<16x32xf32>
    %204 = arith.mulf %200, %203 : vector<16x32xf32>
    %205 = arith.addf %202, %204 : vector<16x32xf32>
    %206 = math.tanh %205 : vector<16x32xf32>
    %cst_50 = arith.constant 1.000000e+00 : f32
    %207 = vector.broadcast %cst_50 : f32 to vector<16x32xf32>
    %208 = arith.subf %207, %201 : vector<16x32xf32>
    %209 = arith.mulf %208, %206 : vector<16x32xf32>
    %210 = arith.mulf %201, %164 : vector<16x32xf32>
    %211 = arith.addf %209, %210 : vector<16x32xf32>
    %c4 = arith.constant 4 : index
    %c0_51 = arith.constant 0 : index
    %c0_52 = arith.constant 0 : index
    %212 = vector.load %arg11[%c4, %c0_51, %c0_52] : memref<8x16x96xf32, #tpu.memory_space<vmem>>, vector<1x16x96xf32>
    %213 = vector.shape_cast %212 : vector<1x16x96xf32> to vector<16x96xf32>
    %214 = arith.truncf %189 : vector<16x32xf32> to vector<16x32xbf16>
    %cst_53 = arith.constant dense<0.000000e+00> : vector<16x96xf32>
    %215 = tpu.matmul %214, %21, %cst_53 {dimension_numbers = #tpu.dot_dimension_numbers<[1], [0], [0], [1], [0, 0, 1, 1], [], []>} : vector<16x32xbf16>, vector<32x96xbf16>, vector<16x96xf32> -> vector<16x96xf32>
    %216 = vector.extract_strided_slice %213 {offsets = [0, 0], sizes = [16, 64], strides = [1, 1]} : vector<16x96xf32> to vector<16x64xf32>
    %217 = vector.extract_strided_slice %215 {offsets = [0, 0], sizes = [16, 64], strides = [1, 1]} : vector<16x96xf32> to vector<16x64xf32>
    %218 = arith.addf %216, %217 : vector<16x64xf32>
    %219 = arith.negf %218 : vector<16x64xf32>
    %220 = math.exp %219 : vector<16x64xf32>
    %cst_54 = arith.constant 1.000000e+00 : f32
    %221 = vector.broadcast %cst_54 : f32 to vector<16x64xf32>
    %222 = arith.addf %221, %220 : vector<16x64xf32>
    %223 = arith.divf %221, %222 : vector<16x64xf32>
    %224 = vector.extract_strided_slice %223 {offsets = [0, 0], sizes = [16, 32], strides = [1, 1]} : vector<16x64xf32> to vector<16x32xf32>
    %225 = vector.extract_strided_slice %223 {offsets = [0, 32], sizes = [16, 32], strides = [1, 1]} : vector<16x64xf32> to vector<16x32xf32>
    %226 = vector.extract_strided_slice %213 {offsets = [0, 64], sizes = [16, 32], strides = [1, 1]} : vector<16x96xf32> to vector<16x32xf32>
    %227 = vector.extract_strided_slice %215 {offsets = [0, 64], sizes = [16, 32], strides = [1, 1]} : vector<16x96xf32> to vector<16x32xf32>
    %228 = arith.addf %227, %17 : vector<16x32xf32>
    %229 = arith.mulf %224, %228 : vector<16x32xf32>
    %230 = arith.addf %226, %229 : vector<16x32xf32>
    %231 = math.tanh %230 : vector<16x32xf32>
    %cst_55 = arith.constant 1.000000e+00 : f32
    %232 = vector.broadcast %cst_55 : f32 to vector<16x32xf32>
    %233 = arith.subf %232, %225 : vector<16x32xf32>
    %234 = arith.mulf %233, %231 : vector<16x32xf32>
    %235 = arith.mulf %225, %189 : vector<16x32xf32>
    %236 = arith.addf %234, %235 : vector<16x32xf32>
    %237 = tpu.concatenate %236, %211 in 1 : vector<16x32xf32>, vector<16x32xf32> -> vector<16x64xf32>
    %238 = arith.truncf %237 : vector<16x64xf32> to vector<16x64xbf16>
    %cst_56 = arith.constant dense<0.000000e+00> : vector<16x128xf32>
    %239 = tpu.matmul %238, %22, %cst_56 {dimension_numbers = #tpu.dot_dimension_numbers<[1], [0], [0], [1], [0, 0, 1, 1], [], []>} : vector<16x64xbf16>, vector<64x128xbf16>, vector<16x128xf32> -> vector<16x128xf32>
    %240 = arith.addf %239, %20 : vector<16x128xf32>
    %241 = vector.extract_strided_slice %240 {offsets = [0, 0], sizes = [16, 64], strides = [1, 1]} : vector<16x128xf32> to vector<16x64xf32>
    %242 = arith.negf %241 : vector<16x64xf32>
    %243 = math.exp %242 : vector<16x64xf32>
    %cst_57 = arith.constant 1.000000e+00 : f32
    %244 = vector.broadcast %cst_57 : f32 to vector<16x64xf32>
    %245 = arith.addf %244, %243 : vector<16x64xf32>
    %246 = arith.divf %244, %245 : vector<16x64xf32>
    %247 = vector.extract_strided_slice %246 {offsets = [0, 0], sizes = [16, 32], strides = [1, 1]} : vector<16x64xf32> to vector<16x32xf32>
    %248 = vector.extract_strided_slice %246 {offsets = [0, 32], sizes = [16, 32], strides = [1, 1]} : vector<16x64xf32> to vector<16x32xf32>
    %249 = vector.extract_strided_slice %240 {offsets = [0, 64], sizes = [16, 32], strides = [1, 1]} : vector<16x128xf32> to vector<16x32xf32>
    %250 = vector.extract_strided_slice %240 {offsets = [0, 96], sizes = [16, 32], strides = [1, 1]} : vector<16x128xf32> to vector<16x32xf32>
    %251 = arith.mulf %247, %250 : vector<16x32xf32>
    %252 = arith.addf %249, %251 : vector<16x32xf32>
    %253 = math.tanh %252 : vector<16x32xf32>
    %cst_58 = arith.constant 1.000000e+00 : f32
    %254 = vector.broadcast %cst_58 : f32 to vector<16x32xf32>
    %255 = arith.subf %254, %248 : vector<16x32xf32>
    %256 = arith.mulf %255, %253 : vector<16x32xf32>
    %257 = arith.mulf %248, %211 : vector<16x32xf32>
    %258 = arith.addf %256, %257 : vector<16x32xf32>
    %c5 = arith.constant 5 : index
    %c0_59 = arith.constant 0 : index
    %c0_60 = arith.constant 0 : index
    %259 = vector.load %arg11[%c5, %c0_59, %c0_60] : memref<8x16x96xf32, #tpu.memory_space<vmem>>, vector<1x16x96xf32>
    %260 = vector.shape_cast %259 : vector<1x16x96xf32> to vector<16x96xf32>
    %261 = arith.truncf %236 : vector<16x32xf32> to vector<16x32xbf16>
    %cst_61 = arith.constant dense<0.000000e+00> : vector<16x96xf32>
    %262 = tpu.matmul %261, %21, %cst_61 {dimension_numbers = #tpu.dot_dimension_numbers<[1], [0], [0], [1], [0, 0, 1, 1], [], []>} : vector<16x32xbf16>, vector<32x96xbf16>, vector<16x96xf32> -> vector<16x96xf32>
    %263 = vector.extract_strided_slice %260 {offsets = [0, 0], sizes = [16, 64], strides = [1, 1]} : vector<16x96xf32> to vector<16x64xf32>
    %264 = vector.extract_strided_slice %262 {offsets = [0, 0], sizes = [16, 64], strides = [1, 1]} : vector<16x96xf32> to vector<16x64xf32>
    %265 = arith.addf %263, %264 : vector<16x64xf32>
    %266 = arith.negf %265 : vector<16x64xf32>
    %267 = math.exp %266 : vector<16x64xf32>
    %cst_62 = arith.constant 1.000000e+00 : f32
    %268 = vector.broadcast %cst_62 : f32 to vector<16x64xf32>
    %269 = arith.addf %268, %267 : vector<16x64xf32>
    %270 = arith.divf %268, %269 : vector<16x64xf32>
    %271 = vector.extract_strided_slice %270 {offsets = [0, 0], sizes = [16, 32], strides = [1, 1]} : vector<16x64xf32> to vector<16x32xf32>
    %272 = vector.extract_strided_slice %270 {offsets = [0, 32], sizes = [16, 32], strides = [1, 1]} : vector<16x64xf32> to vector<16x32xf32>
    %273 = vector.extract_strided_slice %260 {offsets = [0, 64], sizes = [16, 32], strides = [1, 1]} : vector<16x96xf32> to vector<16x32xf32>
    %274 = vector.extract_strided_slice %262 {offsets = [0, 64], sizes = [16, 32], strides = [1, 1]} : vector<16x96xf32> to vector<16x32xf32>
    %275 = arith.addf %274, %17 : vector<16x32xf32>
    %276 = arith.mulf %271, %275 : vector<16x32xf32>
    %277 = arith.addf %273, %276 : vector<16x32xf32>
    %278 = math.tanh %277 : vector<16x32xf32>
    %cst_63 = arith.constant 1.000000e+00 : f32
    %279 = vector.broadcast %cst_63 : f32 to vector<16x32xf32>
    %280 = arith.subf %279, %272 : vector<16x32xf32>
    %281 = arith.mulf %280, %278 : vector<16x32xf32>
    %282 = arith.mulf %272, %236 : vector<16x32xf32>
    %283 = arith.addf %281, %282 : vector<16x32xf32>
    %284 = tpu.concatenate %283, %258 in 1 : vector<16x32xf32>, vector<16x32xf32> -> vector<16x64xf32>
    %285 = arith.truncf %284 : vector<16x64xf32> to vector<16x64xbf16>
    %cst_64 = arith.constant dense<0.000000e+00> : vector<16x128xf32>
    %286 = tpu.matmul %285, %22, %cst_64 {dimension_numbers = #tpu.dot_dimension_numbers<[1], [0], [0], [1], [0, 0, 1, 1], [], []>} : vector<16x64xbf16>, vector<64x128xbf16>, vector<16x128xf32> -> vector<16x128xf32>
    %287 = arith.addf %286, %20 : vector<16x128xf32>
    %288 = vector.extract_strided_slice %287 {offsets = [0, 0], sizes = [16, 64], strides = [1, 1]} : vector<16x128xf32> to vector<16x64xf32>
    %289 = arith.negf %288 : vector<16x64xf32>
    %290 = math.exp %289 : vector<16x64xf32>
    %cst_65 = arith.constant 1.000000e+00 : f32
    %291 = vector.broadcast %cst_65 : f32 to vector<16x64xf32>
    %292 = arith.addf %291, %290 : vector<16x64xf32>
    %293 = arith.divf %291, %292 : vector<16x64xf32>
    %294 = vector.extract_strided_slice %293 {offsets = [0, 0], sizes = [16, 32], strides = [1, 1]} : vector<16x64xf32> to vector<16x32xf32>
    %295 = vector.extract_strided_slice %293 {offsets = [0, 32], sizes = [16, 32], strides = [1, 1]} : vector<16x64xf32> to vector<16x32xf32>
    %296 = vector.extract_strided_slice %287 {offsets = [0, 64], sizes = [16, 32], strides = [1, 1]} : vector<16x128xf32> to vector<16x32xf32>
    %297 = vector.extract_strided_slice %287 {offsets = [0, 96], sizes = [16, 32], strides = [1, 1]} : vector<16x128xf32> to vector<16x32xf32>
    %298 = arith.mulf %294, %297 : vector<16x32xf32>
    %299 = arith.addf %296, %298 : vector<16x32xf32>
    %300 = math.tanh %299 : vector<16x32xf32>
    %cst_66 = arith.constant 1.000000e+00 : f32
    %301 = vector.broadcast %cst_66 : f32 to vector<16x32xf32>
    %302 = arith.subf %301, %295 : vector<16x32xf32>
    %303 = arith.mulf %302, %300 : vector<16x32xf32>
    %304 = arith.mulf %295, %258 : vector<16x32xf32>
    %305 = arith.addf %303, %304 : vector<16x32xf32>
    %c6 = arith.constant 6 : index
    %c0_67 = arith.constant 0 : index
    %c0_68 = arith.constant 0 : index
    %306 = vector.load %arg11[%c6, %c0_67, %c0_68] : memref<8x16x96xf32, #tpu.memory_space<vmem>>, vector<1x16x96xf32>
    %307 = vector.shape_cast %306 : vector<1x16x96xf32> to vector<16x96xf32>
    %308 = arith.truncf %283 : vector<16x32xf32> to vector<16x32xbf16>
    %cst_69 = arith.constant dense<0.000000e+00> : vector<16x96xf32>
    %309 = tpu.matmul %308, %21, %cst_69 {dimension_numbers = #tpu.dot_dimension_numbers<[1], [0], [0], [1], [0, 0, 1, 1], [], []>} : vector<16x32xbf16>, vector<32x96xbf16>, vector<16x96xf32> -> vector<16x96xf32>
    %310 = vector.extract_strided_slice %307 {offsets = [0, 0], sizes = [16, 64], strides = [1, 1]} : vector<16x96xf32> to vector<16x64xf32>
    %311 = vector.extract_strided_slice %309 {offsets = [0, 0], sizes = [16, 64], strides = [1, 1]} : vector<16x96xf32> to vector<16x64xf32>
    %312 = arith.addf %310, %311 : vector<16x64xf32>
    %313 = arith.negf %312 : vector<16x64xf32>
    %314 = math.exp %313 : vector<16x64xf32>
    %cst_70 = arith.constant 1.000000e+00 : f32
    %315 = vector.broadcast %cst_70 : f32 to vector<16x64xf32>
    %316 = arith.addf %315, %314 : vector<16x64xf32>
    %317 = arith.divf %315, %316 : vector<16x64xf32>
    %318 = vector.extract_strided_slice %317 {offsets = [0, 0], sizes = [16, 32], strides = [1, 1]} : vector<16x64xf32> to vector<16x32xf32>
    %319 = vector.extract_strided_slice %317 {offsets = [0, 32], sizes = [16, 32], strides = [1, 1]} : vector<16x64xf32> to vector<16x32xf32>
    %320 = vector.extract_strided_slice %307 {offsets = [0, 64], sizes = [16, 32], strides = [1, 1]} : vector<16x96xf32> to vector<16x32xf32>
    %321 = vector.extract_strided_slice %309 {offsets = [0, 64], sizes = [16, 32], strides = [1, 1]} : vector<16x96xf32> to vector<16x32xf32>
    %322 = arith.addf %321, %17 : vector<16x32xf32>
    %323 = arith.mulf %318, %322 : vector<16x32xf32>
    %324 = arith.addf %320, %323 : vector<16x32xf32>
    %325 = math.tanh %324 : vector<16x32xf32>
    %cst_71 = arith.constant 1.000000e+00 : f32
    %326 = vector.broadcast %cst_71 : f32 to vector<16x32xf32>
    %327 = arith.subf %326, %319 : vector<16x32xf32>
    %328 = arith.mulf %327, %325 : vector<16x32xf32>
    %329 = arith.mulf %319, %283 : vector<16x32xf32>
    %330 = arith.addf %328, %329 : vector<16x32xf32>
    %331 = tpu.concatenate %330, %305 in 1 : vector<16x32xf32>, vector<16x32xf32> -> vector<16x64xf32>
    %332 = arith.truncf %331 : vector<16x64xf32> to vector<16x64xbf16>
    %cst_72 = arith.constant dense<0.000000e+00> : vector<16x128xf32>
    %333 = tpu.matmul %332, %22, %cst_72 {dimension_numbers = #tpu.dot_dimension_numbers<[1], [0], [0], [1], [0, 0, 1, 1], [], []>} : vector<16x64xbf16>, vector<64x128xbf16>, vector<16x128xf32> -> vector<16x128xf32>
    %334 = arith.addf %333, %20 : vector<16x128xf32>
    %335 = vector.extract_strided_slice %334 {offsets = [0, 0], sizes = [16, 64], strides = [1, 1]} : vector<16x128xf32> to vector<16x64xf32>
    %336 = arith.negf %335 : vector<16x64xf32>
    %337 = math.exp %336 : vector<16x64xf32>
    %cst_73 = arith.constant 1.000000e+00 : f32
    %338 = vector.broadcast %cst_73 : f32 to vector<16x64xf32>
    %339 = arith.addf %338, %337 : vector<16x64xf32>
    %340 = arith.divf %338, %339 : vector<16x64xf32>
    %341 = vector.extract_strided_slice %340 {offsets = [0, 0], sizes = [16, 32], strides = [1, 1]} : vector<16x64xf32> to vector<16x32xf32>
    %342 = vector.extract_strided_slice %340 {offsets = [0, 32], sizes = [16, 32], strides = [1, 1]} : vector<16x64xf32> to vector<16x32xf32>
    %343 = vector.extract_strided_slice %334 {offsets = [0, 64], sizes = [16, 32], strides = [1, 1]} : vector<16x128xf32> to vector<16x32xf32>
    %344 = vector.extract_strided_slice %334 {offsets = [0, 96], sizes = [16, 32], strides = [1, 1]} : vector<16x128xf32> to vector<16x32xf32>
    %345 = arith.mulf %341, %344 : vector<16x32xf32>
    %346 = arith.addf %343, %345 : vector<16x32xf32>
    %347 = math.tanh %346 : vector<16x32xf32>
    %cst_74 = arith.constant 1.000000e+00 : f32
    %348 = vector.broadcast %cst_74 : f32 to vector<16x32xf32>
    %349 = arith.subf %348, %342 : vector<16x32xf32>
    %350 = arith.mulf %349, %347 : vector<16x32xf32>
    %351 = arith.mulf %342, %305 : vector<16x32xf32>
    %352 = arith.addf %350, %351 : vector<16x32xf32>
    %c7 = arith.constant 7 : index
    %c0_75 = arith.constant 0 : index
    %c0_76 = arith.constant 0 : index
    %353 = vector.load %arg11[%c7, %c0_75, %c0_76] : memref<8x16x96xf32, #tpu.memory_space<vmem>>, vector<1x16x96xf32>
    %354 = vector.shape_cast %353 : vector<1x16x96xf32> to vector<16x96xf32>
    %355 = arith.truncf %330 : vector<16x32xf32> to vector<16x32xbf16>
    %cst_77 = arith.constant dense<0.000000e+00> : vector<16x96xf32>
    %356 = tpu.matmul %355, %21, %cst_77 {dimension_numbers = #tpu.dot_dimension_numbers<[1], [0], [0], [1], [0, 0, 1, 1], [], []>} : vector<16x32xbf16>, vector<32x96xbf16>, vector<16x96xf32> -> vector<16x96xf32>
    %357 = vector.extract_strided_slice %354 {offsets = [0, 0], sizes = [16, 64], strides = [1, 1]} : vector<16x96xf32> to vector<16x64xf32>
    %358 = vector.extract_strided_slice %356 {offsets = [0, 0], sizes = [16, 64], strides = [1, 1]} : vector<16x96xf32> to vector<16x64xf32>
    %359 = arith.addf %357, %358 : vector<16x64xf32>
    %360 = arith.negf %359 : vector<16x64xf32>
    %361 = math.exp %360 : vector<16x64xf32>
    %cst_78 = arith.constant 1.000000e+00 : f32
    %362 = vector.broadcast %cst_78 : f32 to vector<16x64xf32>
    %363 = arith.addf %362, %361 : vector<16x64xf32>
    %364 = arith.divf %362, %363 : vector<16x64xf32>
    %365 = vector.extract_strided_slice %364 {offsets = [0, 0], sizes = [16, 32], strides = [1, 1]} : vector<16x64xf32> to vector<16x32xf32>
    %366 = vector.extract_strided_slice %364 {offsets = [0, 32], sizes = [16, 32], strides = [1, 1]} : vector<16x64xf32> to vector<16x32xf32>
    %367 = vector.extract_strided_slice %354 {offsets = [0, 64], sizes = [16, 32], strides = [1, 1]} : vector<16x96xf32> to vector<16x32xf32>
    %368 = vector.extract_strided_slice %356 {offsets = [0, 64], sizes = [16, 32], strides = [1, 1]} : vector<16x96xf32> to vector<16x32xf32>
    %369 = arith.addf %368, %17 : vector<16x32xf32>
    %370 = arith.mulf %365, %369 : vector<16x32xf32>
    %371 = arith.addf %367, %370 : vector<16x32xf32>
    %372 = math.tanh %371 : vector<16x32xf32>
    %cst_79 = arith.constant 1.000000e+00 : f32
    %373 = vector.broadcast %cst_79 : f32 to vector<16x32xf32>
    %374 = arith.subf %373, %366 : vector<16x32xf32>
    %375 = arith.mulf %374, %372 : vector<16x32xf32>
    %376 = arith.mulf %366, %330 : vector<16x32xf32>
    %377 = arith.addf %375, %376 : vector<16x32xf32>
    %378 = tpu.concatenate %377, %352 in 1 : vector<16x32xf32>, vector<16x32xf32> -> vector<16x64xf32>
    %379 = arith.truncf %378 : vector<16x64xf32> to vector<16x64xbf16>
    %cst_80 = arith.constant dense<0.000000e+00> : vector<16x128xf32>
    %380 = tpu.matmul %379, %22, %cst_80 {dimension_numbers = #tpu.dot_dimension_numbers<[1], [0], [0], [1], [0, 0, 1, 1], [], []>} : vector<16x64xbf16>, vector<64x128xbf16>, vector<16x128xf32> -> vector<16x128xf32>
    %381 = arith.addf %380, %20 : vector<16x128xf32>
    %382 = vector.extract_strided_slice %381 {offsets = [0, 0], sizes = [16, 64], strides = [1, 1]} : vector<16x128xf32> to vector<16x64xf32>
    %383 = arith.negf %382 : vector<16x64xf32>
    %384 = math.exp %383 : vector<16x64xf32>
    %cst_81 = arith.constant 1.000000e+00 : f32
    %385 = vector.broadcast %cst_81 : f32 to vector<16x64xf32>
    %386 = arith.addf %385, %384 : vector<16x64xf32>
    %387 = arith.divf %385, %386 : vector<16x64xf32>
    %388 = vector.extract_strided_slice %387 {offsets = [0, 0], sizes = [16, 32], strides = [1, 1]} : vector<16x64xf32> to vector<16x32xf32>
    %389 = vector.extract_strided_slice %387 {offsets = [0, 32], sizes = [16, 32], strides = [1, 1]} : vector<16x64xf32> to vector<16x32xf32>
    %390 = vector.extract_strided_slice %381 {offsets = [0, 64], sizes = [16, 32], strides = [1, 1]} : vector<16x128xf32> to vector<16x32xf32>
    %391 = vector.extract_strided_slice %381 {offsets = [0, 96], sizes = [16, 32], strides = [1, 1]} : vector<16x128xf32> to vector<16x32xf32>
    %392 = arith.mulf %388, %391 : vector<16x32xf32>
    %393 = arith.addf %390, %392 : vector<16x32xf32>
    %394 = math.tanh %393 : vector<16x32xf32>
    %cst_82 = arith.constant 1.000000e+00 : f32
    %395 = vector.broadcast %cst_82 : f32 to vector<16x32xf32>
    %396 = arith.subf %395, %389 : vector<16x32xf32>
    %397 = arith.mulf %396, %394 : vector<16x32xf32>
    %398 = arith.mulf %389, %352 : vector<16x32xf32>
    %399 = arith.addf %397, %398 : vector<16x32xf32>
    %400 = arith.truncf %399 : vector<16x32xf32> to vector<16x32xbf16>
    %c0_83 = arith.constant 0 : index
    %c0_84 = arith.constant 0 : index
    %401 = vector.load %arg8[%c0_83, %c0_84] : memref<32x128xbf16, #tpu.memory_space<vmem>>, vector<32x128xbf16>
    %cst_85 = arith.constant dense<0.000000e+00> : vector<16x128xf32>
    %402 = tpu.matmul %400, %401, %cst_85 {dimension_numbers = #tpu.dot_dimension_numbers<[1], [0], [0], [1], [0, 0, 1, 1], [], []>} : vector<16x32xbf16>, vector<32x128xbf16>, vector<16x128xf32> -> vector<16x128xf32>
    %c0_86 = arith.constant 0 : index
    %c0_87 = arith.constant 0 : index
    %403 = vector.load %arg9[%c0_86, %c0_87] : memref<1x128xf32, #tpu.memory_space<vmem>>, vector<1x128xf32>
    %404 = vector.broadcast %403 : vector<1x128xf32> to vector<16x128xf32>
    %405 = arith.addf %402, %404 : vector<16x128xf32>
    %c0_88 = arith.constant 0 : index
    %c0_89 = arith.constant 0 : index
    %406 = vector.load %arg10[%c0_88, %c0_89] : memref<16x128xf32, #tpu.memory_space<vmem>>, vector<16x128xf32>
    tpu.vector_store %arg10[%c0_88, %c0_89], %405 {strides = array<i32>} : memref<16x128xf32, #tpu.memory_space<vmem>>, vector<16x128xf32>,
    return
  }
  func.func @transform_0(%arg0: i32) -> (i32, i32, i32) {
    %c0_i32 = arith.constant 0 : i32
    %c0_i32_0 = arith.constant 0 : i32
    %c0_i32_1 = arith.constant 0 : i32
    return %c0_i32, %arg0, %c0_i32_0 : i32, i32, i32
  }
  func.func @transform_1(%arg0: i32) -> (i32, i32) {
    %c0_i32 = arith.constant 0 : i32
    %c0_i32_0 = arith.constant 0 : i32
    return %arg0, %c0_i32 : i32, i32
  }
  func.func @transform_2(%arg0: i32) -> (i32, i32) {
    %c0_i32 = arith.constant 0 : i32
    %c0_i32_0 = arith.constant 0 : i32
    %c0_i32_1 = arith.constant 0 : i32
    return %c0_i32, %c0_i32_0 : i32, i32
  }
  func.func @transform_3(%arg0: i32) -> (i32, i32) {
    %c0_i32 = arith.constant 0 : i32
    %c0_i32_0 = arith.constant 0 : i32
    %c0_i32_1 = arith.constant 0 : i32
    return %c0_i32, %c0_i32_0 : i32, i32
  }
  func.func @transform_4(%arg0: i32) -> (i32, i32) {
    %c0_i32 = arith.constant 0 : i32
    %c0_i32_0 = arith.constant 0 : i32
    %c0_i32_1 = arith.constant 0 : i32
    return %c0_i32, %c0_i32_0 : i32, i32
  }
  func.func @transform_5(%arg0: i32) -> (i32, i32) {
    %c0_i32 = arith.constant 0 : i32
    %c0_i32_0 = arith.constant 0 : i32
    %c0_i32_1 = arith.constant 0 : i32
    return %c0_i32, %c0_i32_0 : i32, i32
  }
  func.func @transform_6(%arg0: i32) -> (i32, i32) {
    %c0_i32 = arith.constant 0 : i32
    %c0_i32_0 = arith.constant 0 : i32
    %c0_i32_1 = arith.constant 0 : i32
    return %c0_i32, %c0_i32_0 : i32, i32
  }
  func.func @transform_7(%arg0: i32) -> (i32, i32) {
    %c0_i32 = arith.constant 0 : i32
    %c0_i32_0 = arith.constant 0 : i32
    %c0_i32_1 = arith.constant 0 : i32
    return %c0_i32, %c0_i32_0 : i32, i32
  }
  func.func @transform_8(%arg0: i32) -> (i32, i32) {
    %c0_i32 = arith.constant 0 : i32
    %c0_i32_0 = arith.constant 0 : i32
    %c0_i32_1 = arith.constant 0 : i32
    return %c0_i32, %c0_i32_0 : i32, i32
  }
  func.func @transform_9(%arg0: i32) -> (i32, i32) {
    %c0_i32 = arith.constant 0 : i32
    %c0_i32_0 = arith.constant 0 : i32
    return %arg0, %c0_i32 : i32, i32
  }
}

</mosaic_0001>

<bundles_post_ra>
// kernel: tpu_custom_call.1
= control target key start
LH: loop header
LB: loop body
LE: loop exit
PB: predicated region body
PF: predicated region fallthrough
CT: control target
= control target key end

     0   :  { %14 = vsyncpa [#allocation5], 0  ;;  %s4167_s0 = inlined_call_operand.vmem [shape: f32[8,32,8], index: 0, kind: input, shape index: {}]   ;;  %s4168_s1 = inlined_call_operand.vmem [shape: f32[16,96], index: 1, kind: input, shape index: {}]   ;;  %s4169_s2 = inlined_call_operand.vmem [shape: bf16[8,96], index: 2, kind: input, shape index: {}]   ;;  %s4170_s3 = inlined_call_operand.vmem [shape: bf16[32,96], index: 3, kind: input, shape index: {}]   ;;  %s4171_s4 = inlined_call_operand.vmem [shape: bf16[64,128], index: 4, kind: input, shape index: {}]   ;;  %s4172_s5 = inlined_call_operand.vmem [shape: f32[1,32], index: 5, kind: input, shape index: {}]   ;;  %s4173_s6 = inlined_call_operand.vmem [shape: f32[1,128], index: 6, kind: input, shape index: {}]   ;;  %s4174_s7 = inlined_call_operand.vmem [shape: bf16[32,128], index: 7, kind: input, shape index: {}]   ;;  %s4175_s8 = inlined_call_operand.vmem [shape: f32[1,128], index: 8, kind: input, shape index: {}]   ;;  %s4176_s9 = inlined_call_operand.hbm [shape: f32[32,128], index: 9, kind: output, shape index: {}]  }
   0x1   :  { %16 = vsyncpa [#allocation5 + $0x1], 0  ;;  %s3424_s30 = smov 0   ;;  %s3426_s10 = smov 0  }
   0x2   :  { %s3428_s11 = smov 0   ;;  %s3430_s12 = smov 0  }
   0x3 LB: > { %s3445_s13 = sadd.s32 4294967295, %s3361_s12   ;;  %s2658_s14 = sadd.s32 4294967294, %s3361_s12   ;;  %s3361_s12 = sphi %s3430_s12, %s4182_s12   ;;  %s3357_s11 = sphi %s3428_s11, %s4181_s11   ;;  %s3353_s10 = sphi %s3426_s10, %s4180_s10   ;;  %s3349_s30 = sphi %s3424_s30, %s4179_s30  }
   0x4   : > { %s3449_s15 = sadd.s32 1, %s3361_s12   ;;  %s29_s16 = sadd.s32 1, %s3357_s11 }
   0x5   : > { %s26_s17 = ssub.s32 %s3361_s12, %s3449_s15  ;;  %p36_p0 = scmp.ne.s32.totalorder %s3357_s11, %s3353_s10 }
   0x6   : > { %p27_p1 = scmp.eq.s32.totalorder %s26_s17, 0  ;;  %p37_p2 = scmp.eq.s32.totalorder %s3361_s12, 0 }
   0x7   : > { %p239_p3 = scmp.eq.s32.totalorder %s3445_s13, 1  ;;  %p244_p4 = scmp.ne.s32.totalorder %s3353_s10, %s3349_s30 }
   0x8   : > { %s3461_s18 = scalar_select %p27_p1, %s3357_s11, %s29_s16  }
   0x9   : > { %p38_p5 = por %p37_p2, %p36_p0  ;;  %p3463_p6 = por %p239_p3, %p36_p0 }
   0xa   : > { %p245_p7 = scmp.eq.s32.totalorder %s2658_s14, 1  ;;  %p2660_p9 = scmp.ge.s32.totalorder %s3361_s12, 2 }
   0xc   : > { %p3467_p8 = por %p245_p7, %p244_p4  ;;  %282 = sbr.rel (%p2660_p9) target bundleno = 29 (0x1d), region = 44 }
  0x11   : > { %285 = sbr.rel (!%p38_p5) target bundleno = 29 (0x1d), region = 48  ;;  %s287_s21 = sand.u32 (%p38_p5), 1, %s3357_s11  }
  0x12   : > { %s2740_s22 = sshll.u32 (%p38_p5), %s3361_s12, 4  ;;  %s2661_s23 = sshll.u32 (%p38_p5), %s287_s21, 7 }
  0x13   : > { %s3479_s26 = scalar_lea.vmem (%p38_p5), %s4167_s0, %s2740_s22  ;;  %s289_s27 = scalar_lea.vmem (%p38_p5), [#allocation3], %s2661_s23 }
  0x14   : > { %v351_v0 = vld [vmem:[%s3479_s26] sm:$0xff] (%p38_p5)  ;;  %v353_v1 = vld [vmem:[%s3479_s26 + $0x8] sm:$0xff] (%p38_p5) }
  0x15   : > { %v355_v2 = vld [vmem:[%s3479_s26 + $0x20] sm:$0xff] (%p38_p5)  ;;  %352 = vst [vmem:[%s289_s27] sm:$0xff] (%p38_p5), %v351_v0  ;;  %354 = vst [vmem:[%s289_s27 + $0x8] sm:$0xff] (%p38_p5), %v353_v1  ;;  %v357_v3 = vld [vmem:[%s3479_s26 + $0x28] sm:$0xff] (%p38_p5) }
  0x16   : > { %356 = vst [vmem:[%s289_s27 + $0x10] sm:$0xff] %v355_v2  ;;  %v359_v4 = vld [vmem:[%s3479_s26 + $0x40] sm:$0xff]  ;;  %v361_v5 = vld [vmem:[%s3479_s26 + $0x48] sm:$0xff]  ;;  %358 = vst [vmem:[%s289_s27 + $0x18] sm:$0xff] %v357_v3 }
  0x17   : > { %360 = vst [vmem:[%s289_s27 + $0x20] sm:$0xff] %v359_v4  ;;  %362 = vst [vmem:[%s289_s27 + $0x28] sm:$0xff] %v361_v5  ;;  %v363_v6 = vld [vmem:[%s3479_s26 + $0x60] sm:$0xff]  ;;  %v365_v7 = vld [vmem:[%s3479_s26 + $0x68] sm:$0xff] }
  0x18   : > { %v367_v8 = vld [vmem:[%s3479_s26 + $0x80] sm:$0xff]  ;;  %364 = vst [vmem:[%s289_s27 + $0x30] sm:$0xff] %v363_v6  ;;  %366 = vst [vmem:[%s289_s27 + $0x38] sm:$0xff] %v365_v7  ;;  %v369_v9 = vld [vmem:[%s3479_s26 + $0x88] sm:$0xff] }
  0x19   : > { %368 = vst [vmem:[%s289_s27 + $0x40] sm:$0xff] %v367_v8  ;;  %v371_v10 = vld [vmem:[%s3479_s26 + $0xa0] sm:$0xff]  ;;  %v373_v11 = vld [vmem:[%s3479_s26 + $0xa8] sm:$0xff]  ;;  %370 = vst [vmem:[%s289_s27 + $0x48] sm:$0xff] %v369_v9 }
  0x1a   : > { %372 = vst [vmem:[%s289_s27 + $0x50] sm:$0xff] %v371_v10  ;;  %374 = vst [vmem:[%s289_s27 + $0x58] sm:$0xff] %v373_v11  ;;  %v375_v12 = vld [vmem:[%s3479_s26 + $0xc0] sm:$0xff]  ;;  %v377_v13 = vld [vmem:[%s3479_s26 + $0xc8] sm:$0xff] }
  0x1b   : > { %v379_v14 = vld [vmem:[%s3479_s26 + $0xe0] sm:$0xff]  ;;  %376 = vst [vmem:[%s289_s27 + $0x60] sm:$0xff] %v375_v12  ;;  %378 = vst [vmem:[%s289_s27 + $0x68] sm:$0xff] %v377_v13  ;;  %v381_v15 = vld [vmem:[%s3479_s26 + $0xe8] sm:$0xff] }
  0x1c   : > { %380 = vst [vmem:[%s289_s27 + $0x70] sm:$0xff] %v379_v14  ;;  %382 = vst [vmem:[%s289_s27 + $0x78] sm:$0xff] %v381_v15 }
  0x1d PF: > { %p2664_p10 = scmp.ge.s32.totalorder %s3361_s12, 1  ;;  %p394_p11 = scmp.lt.s32.totalorder %s3361_s12, 3 }
  0x1f   : > { %p395_p12 = pnand %p2664_p10, %p394_p11 }
  0x20   : > { %s3509_s17 = sand.u32 (!%p395_p12), 1, %s3353_s10   ;;  %s3365_s27 = smov (!%p395_p12), 64  }
  0x21   : > { %398 = sbr.rel (%p395_p12) target bundleno = 6425 (0x1919), region = 90  ;;  %s2665_s21 = sshll.u32 (!%p395_p12), %s3509_s17, 7 }
  0x22   : > { %s3522_s26 = scalar_lea.vmem (!%p395_p12), [#allocation3], %s2665_s21  ;;  %p441_p13 = scmp.lt.s32.totalorder (!%p395_p12), %s3445_s13, 1 }
  0x23   : > { %s3370_s24 = smov (!%p395_p12), 32   ;;  %s2565_s23 = scalar_lea.sflag (!%p395_p12), [#allocation5], %s3509_s17 }
  0x26   : > { %v554_v16 = vld [vmem:[%s4169_s2] sm:$0xf]  ;;  %vm580_vm0 = vcmask 1043456   ;;  %v3363_v17 = vmov 0.0   ;;  %v3506_v18 = vld [vmem:[%s4170_s3 + $0x8] sm:$0xff]   ;;  %vm555_vm1 = vcmask 64512   ;;  %v453_v31 = vlaneseq }
  0x27   : > { %2836 = vmatprep.subr.bf16.mxu1 %v3363_v17  ;;  %3004 = vmatprep.subr.msk.bf16.mxu0 %vm580_vm0, %v554_v16  ;;  %v582_v19 = vsel %vm580_vm0, %v554_v16, 0  ;;  %v3516_v20 = vld [vmem:[%s4170_s3] sm:$0xff]   ;;  %v531_v23 = vld [vmem:[%s3522_s26 + $0x8] sm:$0xff]  ;;  %v532_v24 = vld [vmem:[%s3522_s26 + $0x10] sm:$0xff]  ;;  %vm3364_vm2 = vmmov 0   ;;  %v3366_v28 = vmov 0  }
  0x28   : > { %2819 = vmatpush3.bf16.msra.mxu0 %v582_v19  ;;  %2837 = vmatpush3.bf16.msra.mxu1 %v3506_v18  ;;  %v2676_v21 = vld [vmem:[%s4172_s5] ss:$0 sm:$0xff]  ;;  %v533_v26 = vld [vmem:[%s3522_s26 + $0x18] sm:$0xff]  ;;  %s442_s28 = scalar_select %p441_p13, %s3445_s13, 1  ;;  %v3367_v29 = vmov 1966171168  }
  0x29   : > { %2864 = vmatprep.subr.bf16.mxu0 %v3363_v17  ;;  %v530_v22 = vld [vmem:[%s3522_s26] sm:$0xff]  ;;  %2838 = vmatprep.subr.bf16.mxu1 %v3363_v17  ;;  %v547_v27 = vpack.c.bf16 %v533_v26, %v532_v24  ;;  %v451_v30 = vunpack.c.l.s4 %v3367_v29  ;;  %v454_v33 = vshrl.u32 %v453_v31, 7  ;;  %v3368_v46 = vmov 1983009808  }
  0x2a   : > { %2840 = vmatprep.mubr.msk.bf16.mxu1 %vm3364_vm2, %v3363_v17  ;;  %v546_v25 = vpack.c.bf16 %v531_v23, %v530_v22  ;;  %848 = vrot.lane.b32.xlu0 %v2676_v21, %s3365_s27  ;;  %s2667_s29 = sshll.u32 %s442_s28, 3  ;;  %v684_v47 = vunpack.c.l.s4 %v3368_v46  ;;  %vm733_vm3 = vcmask 785408   ;;  %v3566_v46 = vld [vmem:[%s4171_s4 + $0x18] sm:$0xff]   ;;  %s3369_s28 = smov 96   ;;  %vm789_vm4 = vcmask 261120  }
  0x2b   : > { %v452_v32 = vunpack.c.0.s8 %v451_v30  ;;  %s444_s21 = scalar_lea.vmem %s4168_s1, %s2667_s29  ;;  %v500_v43 = vsub.s32 0, %v454_v33  ;;  %vm926_vm5 = vcmask 523264  }
  0x2c   : > { %2820 = vmatprep.mubr.msk.bf16.mxu0 %vm555_vm1, %v546_v25  ;;  %2839 = vmatpush3.bf16.msra.mxu1 %v3516_v20  ;;  %v447_v35 = vld [vmem:[%s444_s21] sm:$0xff]  ;;  %v685_v54 = vunpack.c.0.s8 %v684_v47  ;;  %s2741_s21 = sshll.u32 %s3445_s13, 8  ;;  %s3371_s13 = smov [#allocation4]  }
  0x2d   : > { %2821 = vmatmul.mubr.msk.bf16.vlgmr.msra.gmra.mxu0 %vm555_vm1, %v547_v27  ;;  %2844 = vmatprep.subr.bf16.mxu1 %v3363_v17  ;;  %v455_v34 = vsub.s32 %v452_v32, %v454_v33  ;;  %v449_v37 = vcombine.high %v447_v35, %v447_v35  ;;  %s4124_s22 = scalar_lea.hbm %s4176_s9, %s2741_s21 }
  0x2e   : > { %v688_v59 = vsub.s32 %v685_v54, %v454_v33  ;;  %2865 = vmatpush3.bf16.msra.mxu0 %v3566_v46 }
  0x2f   : > { %2841 = vmatmul.mubr.bf16.vlgmr.msra.gmra.mxu1 %v3366_v28  ;;  %v456_v36 = vrot.slane %v447_v35, %v455_v34  ;;  %v463_v39 = vrot.slane %v449_v37, %v455_v34  ;;  %2866 = vmatprep.subr.bf16.mxu0 %v3363_v17 }
  0x30   : > { %2852 = vmatprep.mubr.msk.bf16.mxu1 %vm3364_vm2, %v3363_v17  ;;  %2845 = vmatpush3.bf16.msra.mxu1 %v3566_v46 }
  0x31   : > { %v464_v38 = vcombine.high %v456_v36, %v456_v36  ;;  %v472_v40 = vrot.slane %v456_v36, %v455_v34  ;;  %v465_v42 = vcombine.high %v463_v39, %v463_v39  ;;  %v479_v48 = vrot.slane %v463_v39, %v455_v34  ;;  %2846 = vmatprep.subr.bf16.mxu1 %v3363_v17 }
  0x33   : > { %v486_v41 = vrot.slane %v464_v38, %v455_v34  ;;  %v494_v44 = vcombine.high %v472_v40, %v472_v40  ;;  %v493_v49 = vrot.slane %v465_v42, %v455_v34  ;;  %v501_v50 = vrot.slane %v472_v40, %v500_v43 }
  0x34   : > { %v495_v55 = vcombine.high %v479_v48, %v479_v48  ;;  %v517_v60 = vrot.slane %v479_v48, %v500_v43  ;;  %v3572_v48 = vld [vmem:[%s4171_s4 + $0x10] sm:$0xff]  }
  0x35   : > { %v496_v45 = vcombine.high %v486_v41, %v486_v41  ;;  %v505_v51 = vrot.slane %v486_v41, %v500_v43  ;;  %v509_v52 = vrot.slane %v494_v44, %v500_v43  ;;  %v497_v56 = vcombine.high %v493_v49, %v493_v49  ;;  %2847 = vmatpush3.bf16.msra.mxu1 %v3572_v48 }
  0x36   : > { %v521_v61 = vrot.slane %v493_v49, %v500_v43  ;;  %v525_v62 = vrot.slane %v495_v55, %v500_v43  ;;  %2867 = vmatpush3.bf16.msra.mxu0 %v3572_v48  ;;  %2848 = vmatprep.subr.bf16.mxu1 %v3363_v17 }
  0x37   : > { %v513_v53 = vrot.slane %v496_v45, %v500_v43  ;;  %v681_v57 = vcombine.low %v501_v50, %v505_v51  ;;  %v529_v63 = vrot.slane %v497_v56, %v500_v43  ;;  %v3582_v50 = vld [vmem:[%s4171_s4 + $0x8] sm:$0xff]   ;;  %2868 = vmatprep.subr.bf16.mxu0 %v3363_v17  ;;  %v3595_v51 = vld [vmem:[%s4171_s4] sm:$0xff]  }
  0x38   : > { %v698_v2 = vcombine.low %v517_v60, %v521_v61 }
  0x39   : > { %v682_v58 = vcombine.low %v509_v52, %v513_v53  ;;  %v689_v0 = vrot.slane %v681_v57, %v688_v59  ;;  %v699_v3 = vcombine.low %v525_v62, %v529_v63  ;;  %2849 = vmatpush3.bf16.msra.mxu1 %v3582_v50 }
  0x3a   : > { %v706_v5 = vrot.slane %v698_v2, %v688_v59  ;;  %2869 = vmatpush3.bf16.msra.mxu0 %v3582_v50  ;;  %2850 = vmatprep.subr.bf16.mxu1 %v3363_v17 }
  0x3b   : > { %v696_v1 = vrot.slane %v682_v58, %v688_v59  ;;  %v713_v6 = vrot.slane %v699_v3, %v688_v59  ;;  %2870 = vmatprep.subr.bf16.mxu0 %v3363_v17 }
  0x3d   : > { %v3543_v4 = vcombine.low %v689_v0, %v696_v1  ;;  %v3550_v13 = vcombine.low %v706_v5, %v713_v6  ;;  %2851 = vmatpush3.bf16.msra.mxu1 %v3595_v51 }
  0x3e   : > { %2871 = vmatpush3.bf16.msra.mxu0 %v3595_v51  ;;  %2856 = vmatprep.subr.bf16.mxu1 %v3363_v17 }
  0x3f   : > { %2884 = vmatprep.subr.bf16.mxu0 %v3363_v17 }
  0x9c   : > { %v3545_v8 = vpop.permute.xlu0 %848 }
  0xed   : > { %v2822_v7 = vpop.f32.mrf.mxu0 }
  0xee   : > { %v719_v9 = vadd.f32 %v2822_v7, %v3543_v4 }
  0xef   : > { %v618_v10 = vpop.f32.mrf.mxu0  ;;  %v827_v11 = vpop.f32.mrf.mxu1 }
  0xf0   : > { %736 = vst.msk [vmem:[#allocation2 + $0x10] sm:$0xff] %vm733_vm3, %v719_v9  ;;  %v717_v12 = vadd.f32 %v3543_v4, %v618_v10  ;;  %v851_v14 = vadd.f32 %v3545_v8, %v827_v11 }
  0xf1   : > { %v2823_v15 = vpop.f32.mrf.mxu0  ;;  %v2842_v16 = vpop.f32.mrf.mxu1 }
  0xf2   : > { %734 = vst.msk [vmem:[#allocation2] sm:$0xff] %vm733_vm3, %v717_v12  ;;  %v720_v19 = vadd.f32 %v2823_v15, %v3550_v13  ;;  %855 = vrot.lane.b32.xlu0 %v851_v14, %s3365_s27 }
  0xf3   : > { %v621_v21 = vpop.f32.mrf.mxu0  ;;  %v830_v22 = vpop.f32.mrf.mxu1 }
  0xf4   : > { %737 = vst.msk [vmem:[#allocation2 + $0x18] sm:$0xff] %vm733_vm3, %v720_v19  ;;  %v718_v23 = vadd.f32 %v3550_v13, %v621_v21  ;;  %v852_v24 = vadd.f32 %v3545_v8, %v830_v22 }
  0xf5   : > { %v2843_v25 = vpop.f32.mrf.mxu1 }
  0xf6   : > { %735 = vst.msk [vmem:[#allocation2 + $0x8] sm:$0xff] %vm733_vm3, %v718_v23  ;;  %857 = vrot.lane.b32.xlu1 %v852_v24, %s3365_s27 }
  0xf7   : > { %v1022_v23 = vld [vmem:[#allocation2 + $0x10] sm:$0xff] }
  0xf9   : > { %v775_v26 = vld [vmem:[#allocation2] sm:$0xff] }
  0xfa   : > { %v834_v27 = vadd.f32 %v827_v11, %v775_v26 }
  0xfb   : > { %v1023_v25 = vld [vmem:[#allocation2 + $0x18] sm:$0xff] }
  0xfc   : > { %v2680_v29 = vmul.f32 -1.442695, %v834_v27 }
  0xfd   : > { %v776_v28 = vld [vmem:[#allocation2 + $0x8] sm:$0xff] }
  0xfe   : > { %v835_v30 = vadd.f32 %v830_v22, %v776_v28  ;;  %3102 = vpow2.f32 %v2680_v29 }
 0x100   : > { %v2681_v31 = vmul.f32 -1.442695, %v835_v30 }
 0x102   : > { %3104 = vpow2.f32 %v2681_v31 }
 0x10b   : > { %v3103_v32 = vpop.eup %3102 }
 0x10c   : > { %v842_v33 = vadd.f32 1.0, %v3103_v32 }
 0x10e   : > { %3106 = vrcp.f32 %v842_v33 }
 0x10f   : > { %v3105_v34 = vpop.eup %3104 }
 0x110   : > { %v843_v35 = vadd.f32 1.0, %v3105_v34 }
 0x112   : > { %3108 = vrcp.f32 %v843_v35 }
 0x11b   : > { %v3107_v36 = vpop.eup %3106 }
 0x11c   : > { %v875_v53 = vsub.f32 1.0, %v3107_v36  ;;  %v887_v57 = vmul.f32 0.0, %v3107_v36 }
 0x11f   : > { %v3109_v39 = vpop.eup %3108 }
 0x120   : > { %v876_v55 = vsub.f32 1.0, %v3109_v39  ;;  %v888_v58 = vmul.f32 0.0, %v3109_v39 }
 0x164   : > { %v856_v37 = vpop.permute.xlu0 %855 }
 0x165   : > { %v861_v38 = vmul.f32 %v3107_v36, %v856_v37 }
 0x167   : > { %865 = vrot.lane.b32.xlu1 %v861_v38, %s3365_s27 }
 0x168   : > { %v858_v40 = vpop.permute.xlu1 %857 }
 0x169   : > { %v862_v41 = vmul.f32 %v3109_v39, %v858_v40 }
 0x16b   : > { %867 = vrot.lane.b32.xlu0 %v862_v41, %s3365_s27 }
 0x1d9   : > { %v866_v42 = vpop.permute.xlu1 %865 }
 0x1da   : > { %v871_v43 = vadd.f32 %v866_v42, %v775_v26 }
 0x1dc   : > { %3110 = vtanh.f32 %v871_v43 }
 0x1dd   : > { %v868_v44 = vpop.permute.xlu0 %867 }
 0x1de   : > { %v872_v45 = vadd.f32 %v868_v44, %v776_v28  ;;  %v534_v44 = vld [vmem:[%s3522_s26 + $0x20] sm:$0xff] }
 0x1e0   : > { %3112 = vtanh.f32 %v872_v45  ;;  %v535_v45 = vld [vmem:[%s3522_s26 + $0x28] sm:$0xff] }
 0x1e9   : > { %v3111_v47 = vpop.eup %3110 }
 0x1ea   : > { %879 = vrot.lane.b32.xlu1 %v3111_v47, %s3369_s28  ;;  %v536_v47 = vld [vmem:[%s3522_s26 + $0x30] sm:$0xff] }
 0x1ed   : > { %v3113_v49 = vpop.eup %3112 }
 0x1ee   : > { %881 = vrot.lane.b32.xlu0 %v3113_v49, %s3369_s28  ;;  %v548_v49 = vpack.c.bf16 %v535_v45, %v534_v44 }
 0x1f0   : > { %2824 = vmatprep.mubr.msk.bf16.mxu0 %vm555_vm1, %v548_v49  ;;  %v539_v49 = vld [vmem:[%s3522_s26 + $0x48] sm:$0xff] }
 0x25c   : > { %v880_v52 = vpop.permute.xlu1 %879 }
 0x25d   : > { %v885_v54 = vmul.f32 %v880_v52, %v875_v53  ;;  %v537_v52 = vld [vmem:[%s3522_s26 + $0x38] sm:$0xff] }
 0x25f   : > { %v3601_v60 = vadd.f32 %v887_v57, %v885_v54  ;;  %v3643_v54 = vld [vmem:[%s4173_s6] ss:$0 sm:$0xff] }
 0x260   : > { %v882_v56 = vpop.permute.xlu0 %881 }
 0x261   : > { %v886_v59 = vmul.f32 %v882_v56, %v876_v55  ;;  %v549_v55 = vpack.c.bf16 %v537_v52, %v536_v47  ;;  %v538_v47 = vld [vmem:[%s3522_s26 + $0x40] sm:$0xff]  ;;  %v540_v52 = vld [vmem:[%s3522_s26 + $0x50] sm:$0xff] }
 0x263   : > { %v3603_v61 = vadd.f32 %v888_v58, %v886_v59  ;;  %2825 = vmatmul.mubr.msk.bf16.gmra.mxu0 %vm555_vm1, %v549_v55  ;;  %v541_v55 = vld [vmem:[%s3522_s26 + $0x58] sm:$0xff] }
 0x265   : > { %v3054_v62 = vpack.i.bf16 %v3603_v61, %v3601_v60  ;;  %v1024_v63 = vpack.c.bf16 %v3603_v61, %v3601_v60 }
 0x267   : > { %3055 = vrot.lane.b32.xlu1 %v3054_v62, %s3369_s28  ;;  %1026 = vrot.lane.b32.xlu0 %v1024_v63, %s3369_s28 }
 0x2d9   : > { %v3056_v0 = vpop.permute.xlu1 %3055  ;;  %v1027_v7 = vpop.permute.xlu0 %1026 }
 0x2da   : > { %v3058_v1 = vunpack.i.h.bf16 %v3056_v0  ;;  %v3057_v2 = vunpack.i.l.bf16 %v3056_v0 }
 0x2dc   : > { %v900_v3 = vsel %vm789_vm4, %v3058_v1, 0.0  ;;  %v899_v5 = vsel %vm789_vm4, %v3057_v2, 0.0 }
 0x2dd   : > { %v901_v6 = vpack.c.bf16 %v900_v3, %v899_v5 }
 0x2df   : > { %2853 = vmatmul.mubr.msk.bf16.vlgmr.msra.gmra.mxu1 %vm926_vm5, %v901_v6 }
 0x2e0   : > { %2857 = vmatpush3.bf16.msra.mxu1 %v3506_v18  ;;  %2860 = vmatprep.mubr.msk.bf16.mxu1 %vm3364_vm2, %v3363_v17 }
 0x2e1   : > { %2858 = vmatprep.subr.bf16.mxu1 %v3363_v17 }
 0x2e4   : > { %2859 = vmatpush3.bf16.msra.mxu1 %v3516_v20 }
 0x2e5   : > { %2876 = vmatprep.subr.bf16.mxu1 %v3363_v17 }
 0x2e7   : > { %2861 = vmatmul.mubr.msk.bf16.vlgmr.msra.gmra.mxu1 %vm789_vm4, %v1027_v7 }
 0x2e8   : > { %2877 = vmatpush3.bf16.msra.mxu1 %v3506_v18  ;;  %2880 = vmatprep.mubr.msk.bf16.mxu1 %vm3364_vm2, %v3363_v17 }
 0x2e9   : > { %2878 = vmatprep.subr.bf16.mxu1 %v3363_v17 }
 0x2ec   : > { %2879 = vmatpush3.bf16.msra.mxu1 %v3516_v20 }
 0x2ed   : > { %2896 = vmatprep.subr.bf16.mxu1 %v3363_v17 }
 0x39f   : > { %v964_v9 = vpop.f32.mrf.mxu1 }
 0x3a0   : > { %v3649_v56 = vadd.f32 %v3643_v54, %v964_v9 }
 0x3a1   : > { %v2854_v10 = vpop.f32.mrf.mxu1 }
 0x3a3   : > { %v3627_v11 = vpop.f32.mrf.mxu1 }
 0x3a4   : > { %v3664_v7 = vadd.f32 %v3643_v54, %v3627_v11 }
 0x3a5   : > { %v2855_v12 = vpop.f32.mrf.mxu1 }
 0x3a7   : > { %v1065_v14 = vpop.f32.mrf.mxu1 }
 0x3a8   : > { %v1086_v15 = vadd.f32 %v1065_v14, %v3545_v8  ;;  %v1072_v24 = vadd.f32 %v1065_v14, %v1022_v23 }
 0x3a9   : > { %v2862_v16 = vpop.f32.mrf.mxu1 }
 0x3aa   : > { %1090 = vrot.lane.b32.xlu1 %v1086_v15, %s3365_s27  ;;  %v2690_v26 = vmul.f32 -1.442695, %v1072_v24 }
 0x3ab   : > { %v1068_v19 = vpop.f32.mrf.mxu1 }
 0x3ac   : > { %v1087_v21 = vadd.f32 %v1068_v19, %v3545_v8  ;;  %v1073_v27 = vadd.f32 %v1068_v19, %v1023_v25  ;;  %3114 = vpow2.f32 %v2690_v26  ;;  %v2687_v19 = vmul.f32 -1.442695, %v3649_v56 }
 0x3ad   : > { %v2863_v22 = vpop.f32.mrf.mxu1 }
 0x3ae   : > { %1092 = vrot.lane.b32.xlu0 %v1087_v21, %s3365_s27  ;;  %v2691_v28 = vmul.f32 -1.442695, %v1073_v27  ;;  %v2688_v21 = vmul.f32 -1.442695, %v3664_v7 }
 0x3b0   : > { %3116 = vpow2.f32 %v2691_v28 }
 0x3b9   : > { %v3115_v29 = vpop.eup %3114 }
 0x3ba   : > { %v1080_v30 = vadd.f32 1.0, %v3115_v29 }
 0x3bc   : > { %3118 = vrcp.f32 %v1080_v30 }
 0x3bd   : > { %v3117_v31 = vpop.eup %3116 }
 0x3be   : > { %v1081_v32 = vadd.f32 1.0, %v3117_v31 }
 0x3c0   : > { %3120 = vrcp.f32 %v1081_v32 }
 0x3c9   : > { %v3119_v33 = vpop.eup %3118 }
 0x3ca   : > { %v1110_v58 = vsub.f32 1.0, %v3119_v33  ;;  %v1122_v0 = vmul.f32 %v3119_v33, %v3601_v60  ;;  %v2826_v60 = vpop.f32.mrf.mxu0 }
 0x3cc   : > { %v634_v9 = vpop.f32.mrf.mxu0 }
 0x3cd   : > { %v3121_v36 = vpop.eup %3120  ;;  %v721_v10 = vadd.f32 %v3543_v4, %v634_v9 }
 0x3ce   : > { %v1111_v62 = vsub.f32 1.0, %v3121_v36  ;;  %v1123_v1 = vmul.f32 %v3121_v36, %v3603_v61  ;;  %v723_v61 = vadd.f32 %v2826_v60, %v3543_v4  ;;  %v2827_v12 = vpop.f32.mrf.mxu0  ;;  %v542_v60 = vld [vmem:[%s3522_s26 + $0x60] sm:$0xff] }
 0x3cf   : > { %738 = vst.msk [vmem:[#allocation2 + $0x20] sm:$0xff] %vm733_vm3, %v721_v10  ;;  %v724_v14 = vadd.f32 %v2827_v12, %v3550_v13  ;;  %v544_v12 = vld [vmem:[%s3522_s26 + $0x70] sm:$0xff] }
 0x3d0   : > { %740 = vst.msk [vmem:[#allocation2 + $0x30] sm:$0xff] %vm733_vm3, %v723_v61  ;;  %v637_v15 = vpop.f32.mrf.mxu0  ;;  %v543_v61 = vld [vmem:[%s3522_s26 + $0x68] sm:$0xff] }
 0x3d1   : > { %741 = vst.msk [vmem:[#allocation2 + $0x38] sm:$0xff] %vm733_vm3, %v724_v14  ;;  %v722_v11 = vadd.f32 %v3550_v13, %v637_v15  ;;  %v552_v10 = vpack.c.bf16 %v543_v61, %v542_v60  ;;  %v545_v14 = vld [vmem:[%s3522_s26 + $0x78] sm:$0xff] }
 0x3d3   : > { %739 = vst.msk [vmem:[#allocation2 + $0x28] sm:$0xff] %vm733_vm3, %v722_v11  ;;  %v553_v11 = vpack.c.bf16 %v545_v14, %v544_v12 }
 0x41c   : > { %v1091_v34 = vpop.permute.xlu1 %1090 }
 0x41d   : > { %v1096_v35 = vmul.f32 %v3119_v33, %v1091_v34 }
 0x41f   : > { %1100 = vrot.lane.b32.xlu1 %v1096_v35, %s3365_s27 }
 0x420   : > { %v1093_v37 = vpop.permute.xlu0 %1092 }
 0x421   : > { %v1097_v38 = vmul.f32 %v3121_v36, %v1093_v37  ;;  %v1232_v36 = vld [vmem:[#allocation2 + $0x20] sm:$0xff] }
 0x423   : > { %1102 = vrot.lane.b32.xlu0 %v1097_v38, %s3365_s27  ;;  %v1233_v38 = vld [vmem:[#allocation2 + $0x28] sm:$0xff] }
 0x491   : > { %v1101_v39 = vpop.permute.xlu1 %1100 }
 0x492   : > { %v1106_v40 = vadd.f32 %v1101_v39, %v1022_v23 }
 0x494   : > { %3122 = vtanh.f32 %v1106_v40 }
 0x495   : > { %v1103_v41 = vpop.permute.xlu0 %1102 }
 0x496   : > { %v1107_v42 = vadd.f32 %v1103_v41, %v1023_v25 }
 0x498   : > { %3124 = vtanh.f32 %v1107_v42 }
 0x499   : > { %3126 = vpow2.f32 %v2687_v19 }
 0x49a   : > { %3128 = vpow2.f32 %v2688_v21 }
 0x4a1   : > { %v3123_v43 = vpop.eup %3122 }
 0x4a2   : > { %1114 = vrot.lane.b32.xlu1 %v3123_v43, %s3369_s28 }
 0x4a5   : > { %v3125_v53 = vpop.eup %3124 }
 0x4a6   : > { %1116 = vrot.lane.b32.xlu0 %v3125_v53, %s3369_s28  ;;  %v3127_v22 = vpop.eup %3126  ;;  %v550_v53 = vpack.c.bf16 %v539_v49, %v538_v47 }
 0x4a7   : > { %v977_v23 = vadd.f32 1.0, %v3127_v22  ;;  %v3129_v24 = vpop.eup %3128 }
 0x4a8   : > { %2828 = vmatprep.mubr.msk.bf16.mxu0 %vm555_vm1, %v550_v53 }
 0x4a9   : > { %3130 = vrcp.f32 %v977_v23 }
 0x4aa   : > { %985 = vrot.lane.b32.xlu0 %v3649_v56, %s3370_s24 }
 0x514   : > { %v1115_v57 = vpop.permute.xlu1 %1114 }
 0x515   : > { %v1120_v59 = vmul.f32 %v1115_v57, %v1110_v58  ;;  %v551_v57 = vpack.c.bf16 %v541_v55, %v540_v52 }
 0x517   : > { %v3655_v3 = vadd.f32 %v1122_v0, %v1120_v59  ;;  %2829 = vmatmul.mubr.msk.bf16.gmra.mxu0 %vm555_vm1, %v551_v57 }
 0x518   : > { %v1117_v63 = vpop.permute.xlu0 %1116  ;;  %2832 = vmatprep.mubr.msk.bf16.mxu0 %vm555_vm1, %v552_v10 }
 0x519   : > { %v1121_v2 = vmul.f32 %v1117_v63, %v1111_v62 }
 0x51b   : > { %v3657_v5 = vadd.f32 %v1123_v1, %v1121_v2 }
 0x51c   : > { %v986_v27 = vpop.permute.xlu0 %985 }
 0x51d   : > { %v1234_v6 = vpack.c.bf16 %v3657_v5, %v3655_v3 }
 0x51f   : > { %1236 = vrot.lane.b32.xlu1 %v1234_v6, %s3369_s28  ;;  %2833 = vmatmul.mubr.msk.bf16.gmra.mxu0 %vm555_vm1, %v553_v11 }
 0x520   : > { %2872 = vmatprep.mubr.msk.bf16.mxu0 %vm3364_vm2, %v3363_v17 }
 0x523   : > { %987 = vrot.lane.b32.xlu1 %v3664_v7, %s3370_s24 }
 0x591   : > { %v1237_v16 = vpop.permute.xlu1 %1236 }
 0x592   : > { %2881 = vmatmul.mubr.msk.bf16.vlgmr.msra.gmra.mxu1 %vm789_vm4, %v1237_v16  ;;  %v3059_v16 = vpack.i.bf16 %v3657_v5, %v3655_v3 }
 0x593   : > { %2897 = vmatpush3.bf16.msra.mxu1 %v3506_v18  ;;  %2900 = vmatprep.mubr.msk.bf16.mxu1 %vm3364_vm2, %v3363_v17  ;;  %v978_v18 = vadd.f32 1.0, %v3129_v24 }
 0x594   : > { %2898 = vmatprep.subr.bf16.mxu1 %v3363_v17 }
 0x595   : > { %3132 = vrcp.f32 %v978_v18  ;;  %v988_v32 = vpop.permute.xlu1 %987 }
 0x597   : > { %2899 = vmatpush3.bf16.msra.mxu1 %v3516_v20  ;;  %v3687_v20 = vpop.eup %3130 }
 0x598   : > { %2904 = vmatprep.subr.bf16.mxu1 %v3363_v17  ;;  %v991_v30 = vmul.f32 %v3687_v20, %v986_v27 }
 0x5a2   : > { %v3693_v34 = vpop.eup %3132 }
 0x5a3   : > { %v992_v35 = vmul.f32 %v3693_v34, %v988_v32 }
 0x652   : > { %v1275_v25 = vpop.f32.mrf.mxu1 }
 0x653   : > { %v1296_v26 = vadd.f32 %v1275_v25, %v3545_v8  ;;  %v1282_v37 = vadd.f32 %v1275_v25, %v1232_v36  ;;  %v1005_v25 = vsub.f32 1.0, %v3687_v20 }
 0x654   : > { %v2882_v28 = vpop.f32.mrf.mxu1 }
 0x655   : > { %1300 = vrot.lane.b32.xlu0 %v1296_v26, %s3365_s27  ;;  %v2696_v39 = vmul.f32 -1.442695, %v1282_v37  ;;  %v1006_v28 = vsub.f32 1.0, %v3693_v34 }
 0x656   : > { %v1278_v29 = vpop.f32.mrf.mxu1 }
 0x657   : > { %v1297_v31 = vadd.f32 %v1278_v29, %v3545_v8  ;;  %v1283_v40 = vadd.f32 %v1278_v29, %v1233_v38  ;;  %3134 = vpow2.f32 %v2696_v39 }
 0x658   : > { %v2883_v33 = vpop.f32.mrf.mxu1 }
 0x659   : > { %995 = vrot.lane.b32.xlu0 %v991_v30, %s3365_s27  ;;  %1302 = vrot.lane.b32.xlu1 %v1297_v31, %s3365_s27  ;;  %v2697_v41 = vmul.f32 -1.442695, %v1283_v40  ;;  %v1017_v31 = vmul.f32 0.0, %v3687_v20  ;;  %v1018_v33 = vmul.f32 0.0, %v3693_v34  ;;  %v2830_v20 = vpop.f32.mrf.mxu0 }
 0x65a   : > { %v727_v34 = vadd.f32 %v2830_v20, %v3543_v4 }
 0x65b   : > { %3136 = vpow2.f32 %v2697_v41 }
 0x65c   : > { %744 = vst.msk [vmem:[#allocation2 + $0x50] sm:$0xff] %vm733_vm3, %v727_v34 }
 0x65d   : > { %997 = vrot.lane.b32.xlu1 %v992_v35, %s3365_s27 }
 0x664   : > { %v3135_v42 = vpop.eup %3134 }
 0x665   : > { %v1290_v43 = vadd.f32 1.0, %v3135_v42  ;;  %v650_v42 = vpop.f32.mrf.mxu0 }
 0x667   : > { %3138 = vrcp.f32 %v1290_v43  ;;  %v725_v43 = vadd.f32 %v3543_v4, %v650_v42 }
 0x668   : > { %v3137_v44 = vpop.eup %3136 }
 0x669   : > { %v1291_v45 = vadd.f32 1.0, %v3137_v44  ;;  %v2831_v44 = vpop.f32.mrf.mxu0  ;;  %742 = vst.msk [vmem:[#allocation2 + $0x40] sm:$0xff] %vm733_vm3, %v725_v43 }
 0x66b   : > { %3140 = vrcp.f32 %v1291_v45  ;;  %v728_v45 = vadd.f32 %v2831_v44, %v3550_v13  ;;  %v653_v47 = vpop.f32.mrf.mxu0  ;;  %v1442_v44 = vld [vmem:[#allocation2 + $0x30] sm:$0xff] }
 0x66c   : > { %v726_v49 = vadd.f32 %v3550_v13, %v653_v47  ;;  %v1443_v47 = vld [vmem:[#allocation2 + $0x38] sm:$0xff] }
 0x66d   : > { %745 = vst.msk [vmem:[#allocation2 + $0x58] sm:$0xff] %vm733_vm3, %v728_v45  ;;  %v2834_v52 = vpop.f32.mrf.mxu0 }
 0x66e   : > { %743 = vst.msk [vmem:[#allocation2 + $0x48] sm:$0xff] %vm733_vm3, %v726_v49  ;;  %v731_v53 = vadd.f32 %v2834_v52, %v3543_v4 }
 0x66f   : > { %v666_v55 = vpop.f32.mrf.mxu0 }
 0x670   : > { %748 = vst.msk [vmem:[#allocation2 + $0x70] sm:$0xff] %vm733_vm3, %v731_v53  ;;  %v729_v57 = vadd.f32 %v3543_v4, %v666_v55 }
 0x672   : > { %746 = vst.msk [vmem:[#allocation2 + $0x60] sm:$0xff] %vm733_vm3, %v729_v57 }
 0x674   : > { %v3702_v58 = vpop.eup %3138 }
 0x675   : > { %v1332_v4 = vmul.f32 %v3702_v58, %v3655_v3 }
 0x678   : > { %v3707_v63 = vpop.eup %3140 }
 0x679   : > { %v1321_v61 = vsub.f32 1.0, %v3707_v63  ;;  %v1333_v10 = vmul.f32 %v3707_v63, %v3657_v5 }
 0x6c7   : > { %v1301_v59 = vpop.permute.xlu0 %1300 }
 0x6c8   : > { %v1306_v62 = vmul.f32 %v3702_v58, %v1301_v59  ;;  %v2835_v59 = vpop.f32.mrf.mxu0 }
 0x6ca   : > { %1310 = vrot.lane.b32.xlu0 %v1306_v62, %s3365_s27  ;;  %v732_v62 = vadd.f32 %v2835_v59, %v3550_v13 }
 0x6cb   : > { %v996_v0 = vpop.permute.xlu0 %995  ;;  %v1303_v1 = vpop.permute.xlu1 %1302 }
 0x6cc   : > { %v1001_v2 = vadd.f32 %v996_v0, %v3649_v56  ;;  %v1307_v6 = vmul.f32 %v3707_v63, %v1303_v1  ;;  %v669_v0 = vpop.f32.mrf.mxu0  ;;  %749 = vst.msk [vmem:[#allocation2 + $0x78] sm:$0xff] %vm733_vm3, %v732_v62 }
 0x6cd   : > { %v730_v1 = vadd.f32 %v3550_v13, %v669_v0 }
 0x6ce   : > { %3142 = vtanh.f32 %v1001_v2  ;;  %1312 = vrot.lane.b32.xlu1 %v1307_v6, %s3365_s27  ;;  %v1320_v6 = vsub.f32 1.0, %v3702_v58 }
 0x6cf   : > { %v998_v9 = vpop.permute.xlu1 %997  ;;  %747 = vst.msk [vmem:[#allocation2 + $0x68] sm:$0xff] %vm733_vm3, %v730_v1 }
 0x6d0   : > { %v1002_v15 = vadd.f32 %v998_v9, %v3664_v7 }
 0x6d2   : > { %3144 = vtanh.f32 %v1002_v15 }
 0x6db   : > { %v3143_v56 = vpop.eup %3142 }
 0x6dc   : > { %1009 = vrot.lane.b32.xlu0 %v3143_v56, %s3369_s28 }
 0x6df   : > { %v3145_v19 = vpop.eup %3144 }
 0x6e0   : > { %3060 = vrot.lane.b32.xlu0 %v3059_v16, %s3369_s28  ;;  %1011 = vrot.lane.b32.xlu1 %v3145_v19, %s3369_s28 }
 0x73c   : > { %v1311_v7 = vpop.permute.xlu0 %1310 }
 0x73d   : > { %v1316_v21 = vadd.f32 %v1311_v7, %v1232_v36 }
 0x73f   : > { %3146 = vtanh.f32 %v1316_v21 }
 0x740   : > { %v1313_v22 = vpop.permute.xlu1 %1312 }
 0x741   : > { %v1317_v23 = vadd.f32 %v1313_v22, %v1233_v38 }
 0x743   : > { %3148 = vtanh.f32 %v1317_v23 }
 0x74c   : > { %v3147_v24 = vpop.eup %3146 }
 0x74d   : > { %1324 = vrot.lane.b32.xlu1 %v3147_v24, %s3369_s28 }
 0x74e   : > { %v1010_v18 = vpop.permute.xlu0 %1009 }
 0x74f   : > { %v1015_v27 = vmul.f32 %v1010_v18, %v1005_v25 }
 0x750   : > { %v3149_v26 = vpop.eup %3148 }
 0x751   : > { %1326 = vrot.lane.b32.xlu0 %v3149_v26, %s3369_s28  ;;  %v3732_v36 = vadd.f32 %v1017_v31, %v1015_v27 }
 0x752   : > { %v3061_v29 = vpop.permute.xlu0 %3060  ;;  %v1012_v30 = vpop.permute.xlu1 %1011 }
 0x753   : > { %v3062_v32 = vunpack.i.l.bf16 %v3061_v29  ;;  %v1016_v35 = vmul.f32 %v1012_v30, %v1006_v28  ;;  %v3063_v37 = vunpack.i.h.bf16 %v3061_v29 }
 0x755   : > { %v3734_v38 = vadd.f32 %v1018_v33, %v1016_v35  ;;  %v1134_v39 = vsel %vm789_vm4, %v3062_v32, %v3732_v36 }
 0x757   : > { %v1135_v40 = vsel %vm789_vm4, %v3063_v37, %v3734_v38 }
 0x758   : > { %v1136_v41 = vpack.c.bf16 %v1135_v40, %v1134_v39 }
 0x75a   : > { %2873 = vmatmul.mubr.msk.bf16.vlgmr.msra.gmra.mxu0 %vm926_vm5, %v1136_v41 }
 0x75b   : > { %2885 = vmatpush3.bf16.msra.mxu0 %v3566_v46  ;;  %2892 = vmatprep.mubr.msk.bf16.mxu0 %vm3364_vm2, %v3363_v17 }
 0x75c   : > { %2886 = vmatprep.subr.bf16.mxu0 %v3363_v17 }
 0x75f   : > { %2887 = vmatpush3.bf16.msra.mxu0 %v3572_v48 }
 0x760   : > { %2888 = vmatprep.subr.bf16.mxu0 %v3363_v17 }
 0x763   : > { %2889 = vmatpush3.bf16.msra.mxu0 %v3582_v50 }
 0x764   : > { %2890 = vmatprep.subr.bf16.mxu0 %v3363_v17 }
 0x767   : > { %2891 = vmatpush3.bf16.msra.mxu0 %v3595_v51 }
 0x768   : > { %2916 = vmatprep.subr.bf16.mxu0 %v3363_v17 }
 0x7bf   : > { %v1325_v2 = vpop.permute.xlu1 %1324 }
 0x7c0   : > { %v1330_v60 = vmul.f32 %v1325_v2, %v1320_v6 }
 0x7c2   : > { %v3773_v14 = vadd.f32 %v1332_v4, %v1330_v60 }
 0x7c3   : > { %v1327_v9 = vpop.permute.xlu0 %1326 }
 0x7c4   : > { %v1331_v12 = vmul.f32 %v1327_v9, %v1321_v61 }
 0x7c6   : > { %v3775_v15 = vadd.f32 %v1333_v10, %v1331_v12 }
 0x7c8   : > { %v1444_v13 = vpack.c.bf16 %v3775_v15, %v3773_v14  ;;  %v3064_v42 = vpack.i.bf16 %v3775_v15, %v3773_v14 }
 0x7ca   : > { %1446 = vrot.lane.b32.xlu1 %v1444_v13, %s3369_s28 }
 0x81a   : > { %v1174_v11 = vpop.f32.mrf.mxu0 }
 0x81b   : > { %v1175_v56 = vadd.f32 %v3643_v54, %v1174_v11 }
 0x81c   : > { %v2874_v16 = vpop.f32.mrf.mxu0 }
 0x81d   : > { %1195 = vrot.lane.b32.xlu0 %v1175_v56, %s3370_s24  ;;  %v2693_v19 = vmul.f32 -1.442695, %v1175_v56 }
 0x81e   : > { %v1177_v3 = vpop.f32.mrf.mxu0 }
 0x81f   : > { %v1178_v58 = vadd.f32 %v3643_v54, %v1177_v3  ;;  %3150 = vpow2.f32 %v2693_v19 }
 0x820   : > { %v2875_v5 = vpop.f32.mrf.mxu0 }
 0x821   : > { %1197 = vrot.lane.b32.xlu1 %v1178_v58, %s3370_s24  ;;  %v2694_v7 = vmul.f32 -1.442695, %v1178_v58 }
 0x823   : > { %3152 = vpow2.f32 %v2694_v7 }
 0x82c   : > { %v3151_v21 = vpop.eup %3150 }
 0x82d   : > { %v1187_v22 = vadd.f32 1.0, %v3151_v21 }
 0x82f   : > { %3154 = vrcp.f32 %v1187_v22 }
 0x830   : > { %v3153_v23 = vpop.eup %3152 }
 0x831   : > { %v1188_v24 = vadd.f32 1.0, %v3153_v23 }
 0x833   : > { %3156 = vrcp.f32 %v1188_v24 }
 0x83c   : > { %v1447_v63 = vpop.permute.xlu1 %1446  ;;  %v3155_v18 = vpop.eup %3154 }
 0x83d   : > { %2901 = vmatmul.mubr.msk.bf16.vlgmr.msra.gmra.mxu1 %vm789_vm4, %v1447_v63  ;;  %v1215_v4 = vsub.f32 1.0, %v3155_v18 }
 0x83e   : > { %2905 = vmatpush3.bf16.msra.mxu1 %v3566_v46  ;;  %2912 = vmatprep.mubr.msk.bf16.mxu1 %vm3364_vm2, %v3363_v17 }
 0x83f   : > { %2906 = vmatprep.subr.bf16.mxu1 %v3363_v17 }
 0x840   : > { %v3157_v27 = vpop.eup %3156 }
 0x841   : > { %v1216_v12 = vsub.f32 1.0, %v3157_v27  ;;  %v1228_v3 = vmul.f32 %v3157_v27, %v3734_v38  ;;  %v3831_v38 = vld [vmem:[%s4170_s3] sm:$0xff]  }
 0x842   : > { %2907 = vmatpush3.bf16.msra.mxu1 %v3572_v48 }
 0x843   : > { %2908 = vmatprep.subr.bf16.mxu1 %v3363_v17 }
 0x846   : > { %2909 = vmatpush3.bf16.msra.mxu1 %v3582_v50 }
 0x847   : > { %2910 = vmatprep.subr.bf16.mxu1 %v3363_v17 }
 0x84a   : > { %2911 = vmatpush3.bf16.msra.mxu1 %v3595_v51 }
 0x84b   : > { %2936 = vmatprep.subr.bf16.mxu1 %v3363_v17 }
 0x88f   : > { %v1196_v25 = vpop.permute.xlu0 %1195 }
 0x890   : > { %v1201_v26 = vmul.f32 %v3155_v18, %v1196_v25 }
 0x892   : > { %1205 = vrot.lane.b32.xlu0 %v1201_v26, %s3365_s27 }
 0x893   : > { %v1198_v28 = vpop.permute.xlu1 %1197 }
 0x894   : > { %v1202_v29 = vmul.f32 %v3157_v27, %v1198_v28 }
 0x896   : > { %1207 = vrot.lane.b32.xlu1 %v1202_v29, %s3365_s27 }
 0x8fd   : > { %v1485_v30 = vpop.f32.mrf.mxu1 }
 0x8fe   : > { %v1506_v31 = vadd.f32 %v1485_v30, %v3545_v8  ;;  %v1492_v45 = vadd.f32 %v1485_v30, %v1442_v44 }
 0x8ff   : > { %v2902_v32 = vpop.f32.mrf.mxu1 }
 0x900   : > { %1510 = vrot.lane.b32.xlu0 %v1506_v31, %s3365_s27  ;;  %v2702_v49 = vmul.f32 -1.442695, %v1492_v45 }
 0x901   : > { %v1488_v33 = vpop.f32.mrf.mxu1 }
 0x902   : > { %v1507_v35 = vadd.f32 %v1488_v33, %v3545_v8  ;;  %v1493_v52 = vadd.f32 %v1488_v33, %v1443_v47 }
 0x903   : > { %v2903_v37 = vpop.f32.mrf.mxu1 }
 0x904   : > { %v1206_v39 = vpop.permute.xlu0 %1205  ;;  %1512 = vrot.lane.b32.xlu1 %v1507_v35, %s3365_s27  ;;  %v2703_v53 = vmul.f32 -1.442695, %v1493_v52 }
 0x905   : > { %v1211_v40 = vadd.f32 %v1206_v39, %v1175_v56  ;;  %v1227_v56 = vmul.f32 %v3155_v18, %v3732_v36  ;;  %v3822_v36 = vld [vmem:[%s4170_s3 + $0x8] sm:$0xff]  }
 0x907   : > { %3158 = vtanh.f32 %v1211_v40 }
 0x908   : > { %v1208_v41 = vpop.permute.xlu1 %1207 }
 0x909   : > { %v1212_v20 = vadd.f32 %v1208_v41, %v1178_v58 }
 0x90b   : > { %3160 = vtanh.f32 %v1212_v20 }
 0x90c   : > { %3162 = vpow2.f32 %v2702_v49 }
 0x90d   : > { %3164 = vpow2.f32 %v2703_v53 }
 0x914   : > { %v3159_v34 = vpop.eup %3158 }
 0x915   : > { %1219 = vrot.lane.b32.xlu0 %v3159_v34, %s3369_s28 }
 0x918   : > { %v3161_v43 = vpop.eup %3160 }
 0x919   : > { %3065 = vrot.lane.b32.xlu0 %v3064_v42, %s3369_s28  ;;  %1221 = vrot.lane.b32.xlu1 %v3161_v43, %s3369_s28  ;;  %v3163_v55 = vpop.eup %3162 }
 0x91a   : > { %v1500_v57 = vadd.f32 1.0, %v3163_v55  ;;  %v3165_v59 = vpop.eup %3164 }
 0x91b   : > { %v1501_v62 = vadd.f32 1.0, %v3165_v59 }
 0x91c   : > { %3166 = vrcp.f32 %v1500_v57 }
 0x91d   : > { %3168 = vrcp.f32 %v1501_v62 }
 0x929   : > { %v3167_v0 = vpop.eup %3166 }
 0x92a   : > { %v3169_v6 = vpop.eup %3168  ;;  %v1530_v35 = vsub.f32 1.0, %v3167_v0  ;;  %v1542_v41 = vmul.f32 %v3167_v0, %v3773_v14 }
 0x92b   : > { %v1531_v39 = vsub.f32 1.0, %v3169_v6  ;;  %v1543_v20 = vmul.f32 %v3169_v6, %v3775_v15 }
 0x972   : > { %v1511_v1 = vpop.permute.xlu0 %1510 }
 0x973   : > { %v1516_v2 = vmul.f32 %v3167_v0, %v1511_v1 }
 0x975   : > { %1520 = vrot.lane.b32.xlu1 %v1516_v2, %s3365_s27 }
 0x976   : > { %v1513_v60 = vpop.permute.xlu1 %1512 }
 0x977   : > { %v1517_v61 = vmul.f32 %v3169_v6, %v1513_v60 }
 0x979   : > { %1522 = vrot.lane.b32.xlu0 %v1517_v61, %s3365_s27 }
 0x987   : > { %v1220_v9 = vpop.permute.xlu0 %1219 }
 0x988   : > { %v1225_v10 = vmul.f32 %v1220_v9, %v1215_v4 }
 0x98a   : > { %v3810_v5 = vadd.f32 %v1227_v56, %v1225_v10 }
 0x98b   : > { %v3066_v13 = vpop.permute.xlu0 %3065  ;;  %v1222_v11 = vpop.permute.xlu1 %1221 }
 0x98c   : > { %v3067_v16 = vunpack.i.l.bf16 %v3066_v13  ;;  %v1226_v58 = vmul.f32 %v1222_v11, %v1216_v12  ;;  %v3068_v63 = vunpack.i.h.bf16 %v3066_v13 }
 0x98e   : > { %v3812_v19 = vadd.f32 %v1228_v3, %v1226_v58  ;;  %v1344_v7 = vsel %vm789_vm4, %v3067_v16, %v3810_v5 }
 0x990   : > { %v1345_v21 = vsel %vm789_vm4, %v3068_v63, %v3812_v19 }
 0x991   : > { %v1346_v22 = vpack.c.bf16 %v1345_v21, %v1344_v7 }
 0x993   : > { %2893 = vmatmul.mubr.msk.bf16.vlgmr.msra.gmra.mxu0 %vm926_vm5, %v1346_v22 }
 0x994   : > { %2917 = vmatpush3.bf16.msra.mxu0 %v3822_v36  ;;  %2920 = vmatprep.mubr.msk.bf16.mxu0 %vm3364_vm2, %v3363_v17 }
 0x995   : > { %2918 = vmatprep.subr.bf16.mxu0 %v3363_v17 }
 0x998   : > { %2919 = vmatpush3.bf16.msra.mxu0 %v3831_v38 }
 0x999   : > { %2924 = vmatprep.subr.bf16.mxu0 %v3363_v17 }
 0x9e7   : > { %v1521_v23 = vpop.permute.xlu1 %1520 }
 0x9e8   : > { %v1526_v24 = vadd.f32 %v1521_v23, %v1442_v44 }
 0x9ea   : > { %3170 = vtanh.f32 %v1526_v24 }
 0x9eb   : > { %v1523_v18 = vpop.permute.xlu0 %1522 }
 0x9ec   : > { %v1527_v25 = vadd.f32 %v1523_v18, %v1443_v47 }
 0x9ee   : > { %3172 = vtanh.f32 %v1527_v25 }
 0x9f7   : > { %v3171_v26 = vpop.eup %3170 }
 0x9f8   : > { %1534 = vrot.lane.b32.xlu1 %v3171_v26, %s3369_s28 }
 0x9fb   : > { %v3173_v27 = vpop.eup %3172 }
 0x9fc   : > { %1536 = vrot.lane.b32.xlu0 %v3173_v27, %s3369_s28 }
 0xa53   : > { %v1384_v28 = vpop.f32.mrf.mxu0 }
 0xa54   : > { %v1385_v29 = vadd.f32 %v3643_v54, %v1384_v28 }
 0xa55   : > { %v2894_v30 = vpop.f32.mrf.mxu0 }
 0xa56   : > { %1405 = vrot.lane.b32.xlu0 %v1385_v29, %s3370_s24  ;;  %v2699_v47 = vmul.f32 -1.442695, %v1385_v29  ;;  %v1653_v30 = vld [vmem:[#allocation2 + $0x48] sm:$0xff] }
 0xa57   : > { %v1387_v31 = vpop.f32.mrf.mxu0 }
 0xa58   : > { %v1388_v45 = vadd.f32 %v3643_v54, %v1387_v31  ;;  %3174 = vpow2.f32 %v2699_v47 }
 0xa59   : > { %v2895_v32 = vpop.f32.mrf.mxu0 }
 0xa5a   : > { %v2700_v15 = vmul.f32 -1.442695, %v1388_v45 }
 0xa65   : > { %v3175_v49 = vpop.eup %3174 }
 0xa66   : > { %v1397_v14 = vadd.f32 1.0, %v3175_v49 }
 0xa68   : > { %3176 = vrcp.f32 %v1397_v14 }
 0xa69   : > { %3178 = vpow2.f32 %v2700_v15 }
 0xa6a   : > { %v1535_v33 = vpop.permute.xlu1 %1534 }
 0xa6b   : > { %v1540_v37 = vmul.f32 %v1535_v33, %v1530_v35 }
 0xa6d   : > { %v3841_v42 = vadd.f32 %v1542_v41, %v1540_v37 }
 0xa6e   : > { %v1537_v40 = vpop.permute.xlu0 %1536 }
 0xa6f   : > { %v1541_v34 = vmul.f32 %v1537_v40, %v1531_v39 }
 0xa71   : > { %v3843_v43 = vadd.f32 %v1543_v20, %v1541_v34 }
 0xa73   : > { %v1654_v44 = vpack.c.bf16 %v3843_v43, %v3841_v42 }
 0xa75   : > { %1656 = vrot.lane.b32.xlu1 %v1654_v44, %s3369_s28  ;;  %v3177_v52 = vpop.eup %3176 }
 0xa76   : > { %v3179_v57 = vpop.eup %3178  ;;  %v1425_v16 = vsub.f32 1.0, %v3177_v52  ;;  %v1437_v21 = vmul.f32 %v3177_v52, %v3810_v5  ;;  %v1652_v5 = vld [vmem:[#allocation2 + $0x40] sm:$0xff] }
 0xa77   : > { %v1398_v59 = vadd.f32 1.0, %v3179_v57 }
 0xa79   : > { %1407 = vrot.lane.b32.xlu1 %v1388_v45, %s3370_s24  ;;  %3180 = vrcp.f32 %v1398_v59 }
 0xa86   : > { %v3181_v0 = vpop.eup %3180 }
 0xa87   : > { %v1426_v63 = vsub.f32 1.0, %v3181_v0  ;;  %v1438_v23 = vmul.f32 %v3181_v0, %v3812_v19 }
 0xac8   : > { %v1406_v53 = vpop.permute.xlu0 %1405 }
 0xac9   : > { %v1411_v55 = vmul.f32 %v3177_v52, %v1406_v53 }
 0xacb   : > { %1415 = vrot.lane.b32.xlu0 %v1411_v55, %s3365_s27 }
 0xae7   : > { %v1657_v62 = vpop.permute.xlu1 %1656 }
 0xae8   : > { %2921 = vmatmul.mubr.msk.bf16.vlgmr.msra.gmra.mxu0 %vm789_vm4, %v1657_v62 }
 0xae9   : > { %2925 = vmatpush3.bf16.msra.mxu0 %v3566_v46  ;;  %2932 = vmatprep.mubr.msk.bf16.mxu0 %vm3364_vm2, %v3363_v17 }
 0xaea   : > { %2926 = vmatprep.subr.bf16.mxu0 %v3363_v17 }
 0xaeb   : > { %v1408_v1 = vpop.permute.xlu1 %1407 }
 0xaec   : > { %v1412_v2 = vmul.f32 %v3181_v0, %v1408_v1 }
 0xaed   : > { %2927 = vmatpush3.bf16.msra.mxu0 %v3572_v48  ;;  %v3069_v48 = vpack.i.bf16 %v3843_v43, %v3841_v42 }
 0xaee   : > { %1417 = vrot.lane.b32.xlu1 %v1412_v2, %s3365_s27  ;;  %2928 = vmatprep.subr.bf16.mxu0 %v3363_v17 }
 0xaf1   : > { %2929 = vmatpush3.bf16.msra.mxu0 %v3582_v50 }
 0xaf2   : > { %2930 = vmatprep.subr.bf16.mxu0 %v3363_v17 }
 0xaf5   : > { %2931 = vmatpush3.bf16.msra.mxu0 %v3595_v51 }
 0xaf6   : > { %2956 = vmatprep.subr.bf16.mxu0 %v3363_v17 }
 0xb3d   : > { %v1416_v46 = vpop.permute.xlu0 %1415 }
 0xb3e   : > { %v1421_v6 = vadd.f32 %v1416_v46, %v1385_v29 }
 0xb40   : > { %3182 = vtanh.f32 %v1421_v6 }
 0xb4d   : > { %v3183_v60 = vpop.eup %3182 }
 0xb4e   : > { %1429 = vrot.lane.b32.xlu0 %v3183_v60, %s3369_s28 }
 0xb52   : > { %3070 = vrot.lane.b32.xlu0 %v3069_v48, %s3369_s28 }
 0xb60   : > { %v1418_v61 = vpop.permute.xlu1 %1417 }
 0xb61   : > { %v1422_v9 = vadd.f32 %v1418_v61, %v1388_v45 }
 0xb63   : > { %3184 = vtanh.f32 %v1422_v9 }
 0xb70   : > { %v3185_v50 = vpop.eup %3184 }
 0xb71   : > { %1431 = vrot.lane.b32.xlu1 %v3185_v50, %s3369_s28 }
 0xba8   : > { %v1695_v51 = vpop.f32.mrf.mxu0 }
 0xba9   : > { %v1716_v4 = vadd.f32 %v1695_v51, %v3545_v8  ;;  %v1702_v19 = vadd.f32 %v1695_v51, %v1652_v5 }
 0xbaa   : > { %v2922_v10 = vpop.f32.mrf.mxu0 }
 0xbab   : > { %1720 = vrot.lane.b32.xlu1 %v1716_v4, %s3365_s27  ;;  %v2708_v31 = vmul.f32 -1.442695, %v1702_v19 }
 0xbac   : > { %v1698_v12 = vpop.f32.mrf.mxu0 }
 0xbad   : > { %v1717_v13 = vadd.f32 %v1698_v12, %v3545_v8  ;;  %v1703_v32 = vadd.f32 %v1698_v12, %v1653_v30  ;;  %3186 = vpow2.f32 %v2708_v31 }
 0xbae   : > { %v2923_v11 = vpop.f32.mrf.mxu0 }
 0xbaf   : > { %1722 = vrot.lane.b32.xlu0 %v1717_v13, %s3365_s27  ;;  %v2709_v33 = vmul.f32 -1.442695, %v1703_v32 }
 0xbb1   : > { %3188 = vpow2.f32 %v2709_v33 }
 0xbba   : > { %v3187_v35 = vpop.eup %3186 }
 0xbbb   : > { %v1710_v37 = vadd.f32 1.0, %v3187_v35 }
 0xbbd   : > { %3190 = vrcp.f32 %v1710_v37 }
 0xbbe   : > { %v3189_v39 = vpop.eup %3188 }
 0xbbf   : > { %v1711_v40 = vadd.f32 1.0, %v3189_v39 }
 0xbc0   : > { %v1430_v56 = vpop.permute.xlu0 %1429 }
 0xbc1   : > { %v1435_v58 = vmul.f32 %v1430_v56, %v1425_v16  ;;  %3192 = vrcp.f32 %v1711_v40 }
 0xbc3   : > { %v3874_v18 = vadd.f32 %v1437_v21, %v1435_v58  ;;  %v3911_v21 = vld [vmem:[%s4171_s4 + $0x18] sm:$0xff]  }
 0xbc4   : > { %v3071_v3 = vpop.permute.xlu0 %3070 }
 0xbc5   : > { %v3072_v22 = vunpack.i.l.bf16 %v3071_v3  ;;  %v3073_v25 = vunpack.i.h.bf16 %v3071_v3 }
 0xbc7   : > { %v1554_v27 = vsel %vm789_vm4, %v3072_v22, %v3874_v18 }
 0xbca   : > { %v3191_v41 = vpop.eup %3190 }
 0xbcb   : > { %v1740_v48 = vsub.f32 1.0, %v3191_v41  ;;  %v1752_v51 = vmul.f32 %v3191_v41, %v3841_v42 }
 0xbce   : > { %v3193_v44 = vpop.eup %3192 }
 0xbcf   : > { %v1741_v9 = vsub.f32 1.0, %v3193_v44  ;;  %v1753_v4 = vmul.f32 %v3193_v44, %v3843_v43 }
 0xbe3   : > { %v1432_v7 = vpop.permute.xlu1 %1431 }
 0xbe4   : > { %v1436_v24 = vmul.f32 %v1432_v7, %v1426_v63 }
 0xbe6   : > { %v3876_v26 = vadd.f32 %v1438_v23, %v1436_v24 }
 0xbe8   : > { %v1555_v28 = vsel %vm789_vm4, %v3073_v25, %v3876_v26 }
 0xbe9   : > { %v1556_v29 = vpack.c.bf16 %v1555_v28, %v1554_v27  ;;  %v3920_v27 = vld [vmem:[%s4171_s4 + $0x10] sm:$0xff]   ;;  %v3928_v28 = vld [vmem:[%s4171_s4 + $0x8] sm:$0xff]  }
 0xbeb   : > { %2913 = vmatmul.mubr.msk.bf16.vlgmr.msra.gmra.mxu1 %vm926_vm5, %v1556_v29  ;;  %v3935_v29 = vld [vmem:[%s4171_s4] sm:$0xff]  }
 0xbec   : > { %2937 = vmatpush3.bf16.msra.mxu1 %v3822_v36  ;;  %2940 = vmatprep.mubr.msk.bf16.mxu1 %vm3364_vm2, %v3363_v17 }
 0xbed   : > { %2938 = vmatprep.subr.bf16.mxu1 %v3363_v17 }
 0xbf0   : > { %2939 = vmatpush3.bf16.msra.mxu1 %v3831_v38 }
 0xbf1   : > { %2944 = vmatprep.subr.bf16.mxu1 %v3363_v17 }
 0xc1d   : > { %v1721_v20 = vpop.permute.xlu1 %1720 }
 0xc1e   : > { %v1726_v34 = vmul.f32 %v3191_v41, %v1721_v20 }
 0xc20   : > { %1730 = vrot.lane.b32.xlu1 %v1726_v34, %s3365_s27 }
 0xc21   : > { %v1723_v45 = vpop.permute.xlu0 %1722 }
 0xc22   : > { %v1727_v47 = vmul.f32 %v3193_v44, %v1723_v45 }
 0xc24   : > { %1732 = vrot.lane.b32.xlu0 %v1727_v47, %s3365_s27 }
 0xc92   : > { %v1731_v49 = vpop.permute.xlu1 %1730 }
 0xc93   : > { %v1736_v14 = vadd.f32 %v1731_v49, %v1652_v5 }
 0xc95   : > { %3194 = vtanh.f32 %v1736_v14 }
 0xc96   : > { %v1733_v15 = vpop.permute.xlu0 %1732 }
 0xc97   : > { %v1737_v52 = vadd.f32 %v1733_v15, %v1653_v30 }
 0xc99   : > { %3196 = vtanh.f32 %v1737_v52 }
 0xca2   : > { %v3195_v53 = vpop.eup %3194 }
 0xca3   : > { %1744 = vrot.lane.b32.xlu1 %v3195_v53, %s3369_s28 }
 0xca6   : > { %v3197_v55 = vpop.eup %3196 }
 0xca7   : > { %1746 = vrot.lane.b32.xlu0 %v3197_v55, %s3369_s28 }
 0xcab   : > { %v1594_v57 = vpop.f32.mrf.mxu1 }
 0xcac   : > { %v1595_v59 = vadd.f32 %v3643_v54, %v1594_v57 }
 0xcad   : > { %v2914_v62 = vpop.f32.mrf.mxu1 }
 0xcae   : > { %1615 = vrot.lane.b32.xlu0 %v1595_v59, %s3370_s24  ;;  %v2705_v2 = vmul.f32 -1.442695, %v1595_v59 }
 0xcaf   : > { %v1597_v0 = vpop.f32.mrf.mxu1 }
 0xcb0   : > { %3198 = vpow2.f32 %v2705_v2  ;;  %v1598_v58 = vadd.f32 %v3643_v54, %v1597_v0  ;;  %v1863_v2 = vld [vmem:[#allocation2 + $0x58] sm:$0xff] }
 0xcb1   : > { %v2915_v1 = vpop.f32.mrf.mxu1 }
 0xcb2   : > { %v2706_v42 = vmul.f32 -1.442695, %v1598_v58 }
 0xcbd   : > { %v3199_v46 = vpop.eup %3198 }
 0xcbe   : > { %v1607_v6 = vadd.f32 1.0, %v3199_v46 }
 0xcc0   : > { %3200 = vrcp.f32 %v1607_v6 }
 0xcc1   : > { %3202 = vpow2.f32 %v2706_v42 }
 0xccd   : > { %v3201_v56 = vpop.eup %3200 }
 0xcce   : > { %v3203_v43 = vpop.eup %3202  ;;  %v1635_v34 = vsub.f32 1.0, %v3201_v56  ;;  %v1647_v14 = vmul.f32 %v3201_v56, %v3874_v18  ;;  %v1862_v18 = vld [vmem:[#allocation2 + $0x50] sm:$0xff] }
 0xccf   : > { %v1608_v63 = vadd.f32 1.0, %v3203_v43 }
 0xcd1   : > { %3204 = vrcp.f32 %v1608_v63 }
 0xcde   : > { %v3205_v22 = vpop.eup %3204 }
 0xcdf   : > { %v1636_v47 = vsub.f32 1.0, %v3205_v22  ;;  %v1648_v52 = vmul.f32 %v3205_v22, %v3876_v26 }
 0xd15   : > { %v1745_v60 = vpop.permute.xlu1 %1744 }
 0xd16   : > { %v1750_v61 = vmul.f32 %v1745_v60, %v1740_v48 }
 0xd18   : > { %v3897_v12 = vadd.f32 %v1752_v51, %v1750_v61 }
 0xd19   : > { %v1747_v50 = vpop.permute.xlu0 %1746 }
 0xd1a   : > { %v1751_v10 = vmul.f32 %v1747_v50, %v1741_v9 }
 0xd1c   : > { %v3899_v13 = vadd.f32 %v1753_v4, %v1751_v10 }
 0xd1e   : > { %v1864_v11 = vpack.c.bf16 %v3899_v13, %v3897_v12  ;;  %v3074_v19 = vpack.i.bf16 %v3899_v13, %v3897_v12 }
 0xd20   : > { %1866 = vrot.lane.b32.xlu1 %v1864_v11, %s3369_s28  ;;  %v1616_v16 = vpop.permute.xlu0 %1615 }
 0xd21   : > { %v1621_v3 = vmul.f32 %v3201_v56, %v1616_v16 }
 0xd23   : > { %1625 = vrot.lane.b32.xlu0 %v1621_v3, %s3365_s27 }
 0xd24   : > { %1617 = vrot.lane.b32.xlu1 %v1598_v58, %s3370_s24 }
 0xd92   : > { %v1867_v7 = vpop.permute.xlu1 %1866 }
 0xd93   : > { %2941 = vmatmul.mubr.msk.bf16.vlgmr.msra.gmra.mxu1 %vm789_vm4, %v1867_v7 }
 0xd94   : > { %2945 = vmatpush3.bf16.msra.mxu1 %v3911_v21  ;;  %2952 = vmatprep.mubr.msk.bf16.mxu1 %vm3364_vm2, %v3363_v17 }
 0xd95   : > { %v1626_v54 = vpop.permute.xlu0 %1625  ;;  %2946 = vmatprep.subr.bf16.mxu1 %v3363_v17 }
 0xd96   : > { %v1631_v23 = vadd.f32 %v1626_v54, %v1595_v59  ;;  %v1618_v24 = vpop.permute.xlu1 %1617 }
 0xd97   : > { %v1622_v25 = vmul.f32 %v3205_v22, %v1618_v24  ;;  %v3972_v22 = vld [vmem:[%s4173_s6] ss:$0 sm:$0xff] }
 0xd98   : > { %3206 = vtanh.f32 %v1631_v23  ;;  %2947 = vmatpush3.bf16.msra.mxu1 %v3920_v27 }
 0xd99   : > { %1627 = vrot.lane.b32.xlu1 %v1622_v25, %s3365_s27  ;;  %2948 = vmatprep.subr.bf16.mxu1 %v3363_v17 }
 0xd9c   : > { %2949 = vmatpush3.bf16.msra.mxu1 %v3928_v28 }
 0xd9d   : > { %2950 = vmatprep.subr.bf16.mxu1 %v3363_v17 }
 0xda0   : > { %2951 = vmatpush3.bf16.msra.mxu1 %v3935_v29 }
 0xda1   : > { %2976 = vmatprep.subr.bf16.mxu1 %v3363_v17 }
 0xda5   : > { %v3207_v5 = vpop.eup %3206 }
 0xda6   : > { %1639 = vrot.lane.b32.xlu0 %v3207_v5, %s3369_s28 }
 0xdaa   : > { %3075 = vrot.lane.b32.xlu0 %v3074_v19, %s3369_s28 }
 0xe0b   : > { %v1628_v30 = vpop.permute.xlu1 %1627 }
 0xe0c   : > { %v1632_v31 = vadd.f32 %v1628_v30, %v1598_v58 }
 0xe0e   : > { %3208 = vtanh.f32 %v1632_v31 }
 0xe18   : > { %v1640_v20 = vpop.permute.xlu0 %1639 }
 0xe19   : > { %v1645_v45 = vmul.f32 %v1640_v20, %v1635_v34 }
 0xe1b   : > { %v3209_v32 = vpop.eup %3208  ;;  %v3950_v55 = vadd.f32 %v1647_v14, %v1645_v45 }
 0xe1c   : > { %1641 = vrot.lane.b32.xlu1 %v3209_v32, %s3369_s28  ;;  %v3076_v44 = vpop.permute.xlu0 %3075 }
 0xe1d   : > { %v3077_v15 = vunpack.i.l.bf16 %v3076_v44  ;;  %v3078_v57 = vunpack.i.h.bf16 %v3076_v44 }
 0xe1f   : > { %v1764_v62 = vsel %vm789_vm4, %v3077_v15, %v3950_v55 }
 0xe53   : > { %v1905_v33 = vpop.f32.mrf.mxu1 }
 0xe54   : > { %v1926_v35 = vadd.f32 %v1905_v33, %v3545_v8  ;;  %v1912_v26 = vadd.f32 %v1905_v33, %v1862_v18 }
 0xe55   : > { %v2942_v37 = vpop.f32.mrf.mxu1 }
 0xe56   : > { %1930 = vrot.lane.b32.xlu1 %v1926_v35, %s3365_s27  ;;  %v2714_v46 = vmul.f32 -1.442695, %v1912_v26 }
 0xe57   : > { %v1908_v39 = vpop.f32.mrf.mxu1 }
 0xe58   : > { %v1927_v40 = vadd.f32 %v1908_v39, %v3545_v8  ;;  %v1913_v6 = vadd.f32 %v1908_v39, %v1863_v2  ;;  %3210 = vpow2.f32 %v2714_v46 }
 0xe59   : > { %v2943_v41 = vpop.f32.mrf.mxu1 }
 0xe5a   : > { %1932 = vrot.lane.b32.xlu0 %v1927_v40, %s3365_s27  ;;  %v2715_v60 = vmul.f32 -1.442695, %v1913_v6 }
 0xe5c   : > { %3212 = vpow2.f32 %v2715_v60 }
 0xe65   : > { %v3211_v48 = vpop.eup %3210 }
 0xe66   : > { %v1920_v61 = vadd.f32 1.0, %v3211_v48 }
 0xe68   : > { %3214 = vrcp.f32 %v1920_v61 }
 0xe69   : > { %v3213_v9 = vpop.eup %3212 }
 0xe6a   : > { %v1921_v50 = vadd.f32 1.0, %v3213_v9 }
 0xe6c   : > { %3216 = vrcp.f32 %v1921_v50 }
 0xe75   : > { %v3215_v51 = vpop.eup %3214 }
 0xe76   : > { %v1950_v40 = vsub.f32 1.0, %v3215_v51  ;;  %v1962_v44 = vmul.f32 %v3215_v51, %v3897_v12 }
 0xe79   : > { %v3217_v11 = vpop.eup %3216 }
 0xe7a   : > { %v1951_v20 = vsub.f32 1.0, %v3217_v11  ;;  %v1963_v45 = vmul.f32 %v3217_v11, %v3899_v13 }
 0xe8e   : > { %v1642_v49 = vpop.permute.xlu1 %1641 }
 0xe8f   : > { %v1646_v53 = vmul.f32 %v1642_v49, %v1636_v47 }
 0xe91   : > { %v3952_v59 = vadd.f32 %v1648_v52, %v1646_v53 }
 0xe93   : > { %v1765_v0 = vsel %vm789_vm4, %v3078_v57, %v3952_v59 }
 0xe94   : > { %v1766_v1 = vpack.c.bf16 %v1765_v0, %v1764_v62 }
 0xe96   : > { %2933 = vmatmul.mubr.msk.bf16.vlgmr.msra.gmra.mxu0 %vm926_vm5, %v1766_v1 }
 0xe97   : > { %2957 = vmatpush3.bf16.msra.mxu0 %v3822_v36  ;;  %2960 = vmatprep.mubr.msk.bf16.mxu0 %vm3364_vm2, %v3363_v17 }
 0xe98   : > { %2958 = vmatprep.subr.bf16.mxu0 %v3363_v17 }
 0xe9b   : > { %2959 = vmatpush3.bf16.msra.mxu0 %v3831_v38 }
 0xe9c   : > { %2964 = vmatprep.subr.bf16.mxu0 %v3363_v17 }
 0xec8   : > { %v1931_v4 = vpop.permute.xlu1 %1930 }
 0xec9   : > { %v1936_v10 = vmul.f32 %v3215_v51, %v1931_v4 }
 0xecb   : > { %1940 = vrot.lane.b32.xlu1 %v1936_v10, %s3365_s27 }
 0xecc   : > { %v1933_v56 = vpop.permute.xlu0 %1932 }
 0xecd   : > { %v1937_v16 = vmul.f32 %v3217_v11, %v1933_v56 }
 0xecf   : > { %1942 = vrot.lane.b32.xlu0 %v1937_v16, %s3365_s27 }
 0xf3d   : > { %v1941_v3 = vpop.permute.xlu1 %1940 }
 0xf3e   : > { %v1946_v58 = vadd.f32 %v1941_v3, %v1862_v18 }
 0xf40   : > { %3218 = vtanh.f32 %v1946_v58 }
 0xf41   : > { %v1943_v42 = vpop.permute.xlu0 %1942 }
 0xf42   : > { %v1947_v43 = vadd.f32 %v1943_v42, %v1863_v2 }
 0xf44   : > { %3220 = vtanh.f32 %v1947_v43 }
 0xf4d   : > { %v3219_v63 = vpop.eup %3218 }
 0xf4e   : > { %1954 = vrot.lane.b32.xlu1 %v3219_v63, %s3369_s28 }
 0xf51   : > { %v3221_v7 = vpop.eup %3220 }
 0xf52   : > { %1956 = vrot.lane.b32.xlu0 %v3221_v7, %s3369_s28 }
 0xf56   : > { %v1804_v54 = vpop.f32.mrf.mxu0 }
 0xf57   : > { %v1805_v23 = vadd.f32 %v3972_v22, %v1804_v54 }
 0xf58   : > { %v2934_v24 = vpop.f32.mrf.mxu0 }
 0xf59   : > { %1825 = vrot.lane.b32.xlu1 %v1805_v23, %s3370_s24  ;;  %v2711_v30 = vmul.f32 -1.442695, %v1805_v23 }
 0xf5a   : > { %v1807_v25 = vpop.f32.mrf.mxu0 }
 0xf5b   : > { %v1808_v5 = vadd.f32 %v3972_v22, %v1807_v25  ;;  %3222 = vpow2.f32 %v2711_v30 }
 0xf5c   : > { %v2935_v19 = vpop.f32.mrf.mxu0 }
 0xf5d   : > { %1827 = vrot.lane.b32.xlu0 %v1808_v5, %s3370_s24  ;;  %v2712_v31 = vmul.f32 -1.442695, %v1808_v5  ;;  %v2073_v19 = vld [vmem:[#allocation2 + $0x68] sm:$0xff] }
 0xf5f   : > { %3224 = vpow2.f32 %v2712_v31 }
 0xf68   : > { %v3223_v32 = vpop.eup %3222 }
 0xf69   : > { %v1817_v33 = vadd.f32 1.0, %v3223_v32 }
 0xf6b   : > { %3226 = vrcp.f32 %v1817_v33 }
 0xf6c   : > { %v3225_v35 = vpop.eup %3224 }
 0xf6d   : > { %v1818_v37 = vadd.f32 1.0, %v3225_v35 }
 0xf6f   : > { %3228 = vrcp.f32 %v1818_v37 }
 0xf78   : > { %v3227_v52 = vpop.eup %3226 }
 0xf79   : > { %v1845_v61 = vsub.f32 1.0, %v3227_v52  ;;  %v1857_v10 = vmul.f32 %v3227_v52, %v3950_v55 }
 0xf7c   : > { %v3229_v62 = vpop.eup %3228 }
 0xf7d   : > { %v1846_v50 = vsub.f32 1.0, %v3229_v62  ;;  %v1858_v56 = vmul.f32 %v3229_v62, %v3952_v59 }
 0xfc0   : > { %v1955_v39 = vpop.permute.xlu1 %1954 }
 0xfc1   : > { %v1960_v41 = vmul.f32 %v1955_v39, %v1950_v40 }
 0xfc3   : > { %v3980_v49 = vadd.f32 %v1962_v44, %v1960_v41 }
 0xfc4   : > { %v1957_v34 = vpop.permute.xlu0 %1956 }
 0xfc5   : > { %v1961_v47 = vmul.f32 %v1957_v34, %v1951_v20 }
 0xfc7   : > { %v3982_v14 = vadd.f32 %v1963_v45, %v1961_v47 }
 0xfc9   : > { %v2074_v15 = vpack.c.bf16 %v3982_v14, %v3980_v49  ;;  %v3079_v6 = vpack.i.bf16 %v3982_v14, %v3980_v49 }
 0xfcb   : > { %2076 = vrot.lane.b32.xlu1 %v2074_v15, %s3369_s28  ;;  %v1826_v53 = vpop.permute.xlu1 %1825 }
 0xfcc   : > { %v1831_v57 = vmul.f32 %v3227_v52, %v1826_v53 }
 0xfce   : > { %1835 = vrot.lane.b32.xlu0 %v1831_v57, %s3365_s27 }
 0xfcf   : > { %v1828_v0 = vpop.permute.xlu0 %1827 }
 0xfd0   : > { %v1832_v12 = vmul.f32 %v3229_v62, %v1828_v0 }
 0xfd2   : > { %1837 = vrot.lane.b32.xlu1 %v1832_v12, %s3365_s27 }
0x103d   : > { %v2077_v13 = vpop.permute.xlu1 %2076 }
0x103e   : > { %2961 = vmatmul.mubr.msk.bf16.vlgmr.msra.gmra.mxu0 %vm789_vm4, %v2077_v13 }
0x103f   : > { %2965 = vmatpush3.bf16.msra.mxu0 %v3911_v21  ;;  %2972 = vmatprep.mubr.msk.bf16.mxu0 %vm3364_vm2, %v3363_v17 }
0x1040   : > { %v1836_v1 = vpop.permute.xlu0 %1835  ;;  %2966 = vmatprep.subr.bf16.mxu0 %v3363_v17 }
0x1041   : > { %v1841_v18 = vadd.f32 %v1836_v1, %v1805_v23 }
0x1043   : > { %3230 = vtanh.f32 %v1841_v18  ;;  %2967 = vmatpush3.bf16.msra.mxu0 %v3920_v27 }
0x1044   : > { %v1838_v26 = vpop.permute.xlu1 %1837  ;;  %2968 = vmatprep.subr.bf16.mxu0 %v3363_v17 }
0x1045   : > { %v1842_v2 = vadd.f32 %v1838_v26, %v1808_v5 }
0x1047   : > { %3232 = vtanh.f32 %v1842_v2  ;;  %2969 = vmatpush3.bf16.msra.mxu0 %v3928_v28 }
0x1048   : > { %2970 = vmatprep.subr.bf16.mxu0 %v3363_v17 }
0x104b   : > { %2971 = vmatpush3.bf16.msra.mxu0 %v3935_v29 }
0x104c   : > { %2996 = vmatprep.subr.bf16.mxu0 %v3363_v17 }
0x1050   : > { %v3231_v46 = vpop.eup %3230 }
0x1051   : > { %1849 = vrot.lane.b32.xlu0 %v3231_v46, %s3369_s28 }
0x1054   : > { %v3233_v60 = vpop.eup %3232 }
0x1055   : > { %3080 = vrot.lane.b32.xlu0 %v3079_v6, %s3369_s28  ;;  %1851 = vrot.lane.b32.xlu1 %v3233_v60, %s3369_s28 }
0x10c3   : > { %v1850_v48 = vpop.permute.xlu0 %1849 }
0x10c4   : > { %v1855_v9 = vmul.f32 %v1850_v48, %v1845_v61 }
0x10c6   : > { %v4007_v3 = vadd.f32 %v1857_v10, %v1855_v9 }
0x10c7   : > { %v3081_v51 = vpop.permute.xlu0 %3080  ;;  %v1852_v4 = vpop.permute.xlu1 %1851 }
0x10c8   : > { %v3082_v11 = vunpack.i.l.bf16 %v3081_v51  ;;  %v1856_v16 = vmul.f32 %v1852_v4, %v1846_v50  ;;  %v3083_v58 = vunpack.i.h.bf16 %v3081_v51 }
0x10ca   : > { %v4009_v42 = vadd.f32 %v1858_v56, %v1856_v16  ;;  %v1974_v43 = vsel %vm789_vm4, %v3082_v11, %v4007_v3 }
0x10cc   : > { %v1975_v63 = vsel %vm789_vm4, %v3083_v58, %v4009_v42 }
0x10cd   : > { %v1976_v7 = vpack.c.bf16 %v1975_v63, %v1974_v43 }
0x10cf   : > { %2953 = vmatmul.mubr.msk.bf16.vlgmr.msra.gmra.mxu1 %vm926_vm5, %v1976_v7 }
0x10d0   : > { %2977 = vmatpush3.bf16.msra.mxu1 %v3822_v36  ;;  %2980 = vmatprep.mubr.msk.bf16.mxu1 %vm3364_vm2, %v3363_v17  ;;  %v2072_v36 = vld [vmem:[#allocation2 + $0x60] sm:$0xff] }
0x10d1   : > { %2978 = vmatprep.subr.bf16.mxu1 %v3363_v17 }
0x10d4   : > { %2979 = vmatpush3.bf16.msra.mxu1 %v3831_v38 }
0x10d5   : > { %2984 = vmatprep.subr.bf16.mxu1 %v3363_v17 }
0x10fe   : > { %v2115_v55 = vpop.f32.mrf.mxu0 }
0x10ff   : > { %v2136_v59 = vadd.f32 %v2115_v55, %v3545_v8  ;;  %v2122_v5 = vadd.f32 %v2115_v55, %v2072_v36 }
0x1100   : > { %v2962_v54 = vpop.f32.mrf.mxu0 }
0x1101   : > { %2140 = vrot.lane.b32.xlu1 %v2136_v59, %s3365_s27  ;;  %v2720_v30 = vmul.f32 -1.442695, %v2122_v5 }
0x1102   : > { %v2118_v23 = vpop.f32.mrf.mxu0 }
0x1103   : > { %v2137_v24 = vadd.f32 %v2118_v23, %v3545_v8  ;;  %v2123_v31 = vadd.f32 %v2118_v23, %v2073_v19  ;;  %3234 = vpow2.f32 %v2720_v30 }
0x1104   : > { %v2963_v25 = vpop.f32.mrf.mxu0 }
0x1105   : > { %2142 = vrot.lane.b32.xlu0 %v2137_v24, %s3365_s27  ;;  %v2721_v38 = vmul.f32 -1.442695, %v2123_v31 }
0x1107   : > { %3236 = vpow2.f32 %v2721_v38 }
0x1110   : > { %v3235_v32 = vpop.eup %3234 }
0x1111   : > { %v2130_v33 = vadd.f32 1.0, %v3235_v32 }
0x1113   : > { %3238 = vrcp.f32 %v2130_v33 }
0x1114   : > { %v3237_v35 = vpop.eup %3236 }
0x1115   : > { %v2131_v37 = vadd.f32 1.0, %v3237_v35 }
0x1117   : > { %3240 = vrcp.f32 %v2131_v37 }
0x1120   : > { %v3239_v39 = vpop.eup %3238 }
0x1121   : > { %v2160_v56 = vsub.f32 1.0, %v3239_v39  ;;  %v2172_v63 = vmul.f32 %v3239_v39, %v3980_v49 }
0x1124   : > { %v3241_v20 = vpop.eup %3240 }
0x1125   : > { %v2161_v58 = vsub.f32 1.0, %v3241_v20  ;;  %v2173_v7 = vmul.f32 %v3241_v20, %v3982_v14 }
0x1173   : > { %v2141_v40 = vpop.permute.xlu1 %2140 }
0x1174   : > { %v2146_v41 = vmul.f32 %v3239_v39, %v2141_v40 }
0x1176   : > { %2150 = vrot.lane.b32.xlu1 %v2146_v41, %s3365_s27 }
0x1177   : > { %v2143_v34 = vpop.permute.xlu0 %2142 }
0x1178   : > { %v2147_v44 = vmul.f32 %v3241_v20, %v2143_v34 }
0x117a   : > { %2152 = vrot.lane.b32.xlu0 %v2147_v44, %s3365_s27 }
0x118f   : > { %v2014_v45 = vpop.f32.mrf.mxu1 }
0x1190   : > { %v2015_v47 = vadd.f32 %v3972_v22, %v2014_v45 }
0x1191   : > { %v2954_v15 = vpop.f32.mrf.mxu1 }
0x1192   : > { %2035 = vrot.lane.b32.xlu1 %v2015_v47, %s3370_s24  ;;  %v2717_v62 = vmul.f32 -1.442695, %v2015_v47 }
0x1193   : > { %v2017_v52 = vpop.f32.mrf.mxu1 }
0x1194   : > { %v2018_v53 = vadd.f32 %v3972_v22, %v2017_v52  ;;  %3242 = vpow2.f32 %v2717_v62 }
0x1195   : > { %v2955_v57 = vpop.f32.mrf.mxu1 }
0x1196   : > { %2037 = vrot.lane.b32.xlu0 %v2018_v53, %s3370_s24  ;;  %v2718_v0 = vmul.f32 -1.442695, %v2018_v53 }
0x1198   : > { %3244 = vpow2.f32 %v2718_v0 }
0x11a1   : > { %v3243_v26 = vpop.eup %3242 }
0x11a2   : > { %v2027_v2 = vadd.f32 1.0, %v3243_v26  ;;  %v2283_v26 = vld [vmem:[#allocation2 + $0x78] sm:$0xff] }
0x11a5   : > { %v3245_v46 = vpop.eup %3244 }
0x11a6   : > { %v2028_v6 = vadd.f32 1.0, %v3245_v46 }
0x11e8   : > { %v2151_v12 = vpop.permute.xlu1 %2150 }
0x11e9   : > { %v2156_v13 = vadd.f32 %v2151_v12, %v2072_v36 }
0x11eb   : > { %3246 = vtanh.f32 %v2156_v13 }
0x11ec   : > { %v2153_v1 = vpop.permute.xlu0 %2152 }
0x11ed   : > { %v2157_v18 = vadd.f32 %v2153_v1, %v2073_v19  ;;  %v2282_v1 = vld [vmem:[#allocation2 + $0x70] sm:$0xff] }
0x11ef   : > { %3248 = vtanh.f32 %v2157_v18 }
0x11f0   : > { %3250 = vrcp.f32 %v2027_v2 }
0x11f1   : > { %3252 = vrcp.f32 %v2028_v6 }
0x11f8   : > { %v3247_v60 = vpop.eup %3246 }
0x11f9   : > { %2164 = vrot.lane.b32.xlu1 %v3247_v60, %s3369_s28 }
0x11fc   : > { %v3249_v48 = vpop.eup %3248 }
0x11fd   : > { %2166 = vrot.lane.b32.xlu0 %v3249_v48, %s3369_s28  ;;  %v3251_v61 = vpop.eup %3250 }
0x11fe   : > { %v3253_v51 = vpop.eup %3252  ;;  %v2055_v38 = vsub.f32 1.0, %v3251_v61  ;;  %v2067_v37 = vmul.f32 %v3251_v61, %v4007_v3 }
0x11ff   : > { %v2056_v33 = vsub.f32 1.0, %v3253_v51  ;;  %v2068_v39 = vmul.f32 %v3253_v51, %v4009_v42 }
0x1204   : > { %v2036_v9 = vpop.permute.xlu1 %2035 }
0x1205   : > { %v2041_v50 = vmul.f32 %v3251_v61, %v2036_v9 }
0x1207   : > { %2045 = vrot.lane.b32.xlu1 %v2041_v50, %s3365_s27 }
0x1208   : > { %v2038_v4 = vpop.permute.xlu0 %2037 }
0x1209   : > { %v2042_v10 = vmul.f32 %v3253_v51, %v2038_v4 }
0x120b   : > { %2047 = vrot.lane.b32.xlu0 %v2042_v10, %s3365_s27 }
0x126b   : > { %v2165_v11 = vpop.permute.xlu1 %2164 }
0x126c   : > { %v2170_v16 = vmul.f32 %v2165_v11, %v2160_v56 }
0x126e   : > { %v4038_v59 = vadd.f32 %v2172_v63, %v2170_v16 }
0x126f   : > { %v2167_v43 = vpop.permute.xlu0 %2166 }
0x1270   : > { %v2171_v55 = vmul.f32 %v2167_v43, %v2161_v58 }
0x1272   : > { %v4040_v54 = vadd.f32 %v2173_v7, %v2171_v55 }
0x1274   : > { %v2284_v23 = vpack.c.bf16 %v4040_v54, %v4038_v59  ;;  %v3084_v49 = vpack.i.bf16 %v4040_v54, %v4038_v59 }
0x1276   : > { %2286 = vrot.lane.b32.xlu1 %v2284_v23, %s3369_s28 }
0x1279   : > { %v2046_v24 = vpop.permute.xlu1 %2045 }
0x127a   : > { %v2051_v25 = vadd.f32 %v2046_v24, %v2015_v47 }
0x127c   : > { %3254 = vtanh.f32 %v2051_v25 }
0x127d   : > { %v2048_v36 = vpop.permute.xlu0 %2047 }
0x127e   : > { %v2052_v5 = vadd.f32 %v2048_v36, %v2018_v53 }
0x1280   : > { %3256 = vtanh.f32 %v2052_v5 }
0x1289   : > { %v3255_v19 = vpop.eup %3254 }
0x128a   : > { %2059 = vrot.lane.b32.xlu0 %v3255_v19, %s3369_s28 }
0x128d   : > { %v3257_v14 = vpop.eup %3256 }
0x128e   : > { %3085 = vrot.lane.b32.xlu0 %v3084_v49, %s3369_s28  ;;  %2061 = vrot.lane.b32.xlu1 %v3257_v14, %s3369_s28 }
0x12e8   : > { %v2287_v30 = vpop.permute.xlu1 %2286 }
0x12e9   : > { %2981 = vmatmul.mubr.msk.bf16.vlgmr.msra.gmra.mxu1 %vm789_vm4, %v2287_v30 }
0x12ea   : > { %2985 = vmatpush3.bf16.msra.mxu1 %v3911_v21  ;;  %2992 = vmatprep.mubr.msk.bf16.mxu1 %vm3364_vm2, %v3363_v17 }
0x12eb   : > { %2986 = vmatprep.subr.bf16.mxu1 %v3363_v17 }
0x12ee   : > { %2987 = vmatpush3.bf16.msra.mxu1 %v3920_v27 }
0x12ef   : > { %2988 = vmatprep.subr.bf16.mxu1 %v3363_v17 }
0x12f2   : > { %2989 = vmatpush3.bf16.msra.mxu1 %v3928_v28 }
0x12f3   : > { %2990 = vmatprep.subr.bf16.mxu1 %v3363_v17 }
0x12f6   : > { %2991 = vmatpush3.bf16.msra.mxu1 %v3935_v29 }
0x12fc   : > { %v2060_v31 = vpop.permute.xlu0 %2059 }
0x12fd   : > { %v2065_v32 = vmul.f32 %v2060_v31, %v2055_v38 }
0x12ff   : > { %v4062_v41 = vadd.f32 %v2067_v37, %v2065_v32 }
0x1300   : > { %v2062_v21 = vpop.permute.xlu1 %2061  ;;  %v3086_v35 = vpop.permute.xlu0 %3085 }
0x1301   : > { %v2066_v40 = vmul.f32 %v2062_v21, %v2056_v33  ;;  %v3087_v27 = vunpack.i.l.bf16 %v3086_v35  ;;  %v3088_v28 = vunpack.i.h.bf16 %v3086_v35 }
0x1303   : > { %v4064_v20 = vadd.f32 %v2068_v39, %v2066_v40  ;;  %v2184_v34 = vsel %vm789_vm4, %v3087_v27, %v4062_v41 }
0x1305   : > { %v2185_v29 = vsel %vm789_vm4, %v3088_v28, %v4064_v20 }
0x1306   : > { %v2186_v44 = vpack.c.bf16 %v2185_v29, %v2184_v34 }
0x1308   : > { %2973 = vmatmul.mubr.msk.bf16.vlgmr.msra.gmra.mxu0 %vm926_vm5, %v2186_v44 }
0x1309   : > { %3000 = vmatprep.mubr.msk.bf16.mxu0 %vm3364_vm2, %v3363_v17 }
0x13a9   : > { %v2325_v3 = vpop.f32.mrf.mxu1 }
0x13aa   : > { %v2346_v42 = vadd.f32 %v2325_v3, %v3545_v8  ;;  %v2332_v18 = vadd.f32 %v2325_v3, %v2282_v1 }
0x13ab   : > { %v2982_v45 = vpop.f32.mrf.mxu1 }
0x13ac   : > { %2350 = vrot.lane.b32.xlu1 %v2346_v42, %s3365_s27  ;;  %v2726_v2 = vmul.f32 -1.442695, %v2332_v18 }
0x13ad   : > { %v2328_v47 = vpop.f32.mrf.mxu1 }
0x13ae   : > { %v2347_v15 = vadd.f32 %v2328_v47, %v3545_v8  ;;  %v2333_v8 = vadd.f32 %v2328_v47, %v2283_v26  ;;  %3258 = vpow2.f32 %v2726_v2 }
0x13af   : > { %v2983_v52 = vpop.f32.mrf.mxu1 }
0x13b0   : > { %2352 = vrot.lane.b32.xlu0 %v2347_v15, %s3365_s27  ;;  %v2727_v46 = vmul.f32 -1.442695, %v2333_v8 }
0x13b2   : > { %3260 = vpow2.f32 %v2727_v46 }
0x13bb   : > { %v3259_v6 = vpop.eup %3258 }
0x13bc   : > { %v2340_v60 = vadd.f32 1.0, %v3259_v6 }
0x13be   : > { %3262 = vrcp.f32 %v2340_v60 }
0x13bf   : > { %v3261_v48 = vpop.eup %3260 }
0x13c0   : > { %v2341_v61 = vadd.f32 1.0, %v3261_v48 }
0x13c2   : > { %3264 = vrcp.f32 %v2341_v61 }
0x13c8   : > { %v2224_v53 = vpop.f32.mrf.mxu0 }
0x13c9   : > { %v2225_v57 = vadd.f32 %v3972_v22, %v2224_v53 }
0x13ca   : > { %v2974_v62 = vpop.f32.mrf.mxu0 }
0x13cb   : > { %2245 = vrot.lane.b32.xlu1 %v2225_v57, %s3370_s24  ;;  %v2723_v9 = vmul.f32 -1.442695, %v2225_v57  ;;  %v3263_v51 = vpop.eup %3262 }
0x13cc   : > { %v2227_v0 = vpop.f32.mrf.mxu0  ;;  %v2370_v27 = vsub.f32 1.0, %v3263_v51  ;;  %v2382_v44 = vmul.f32 %v3263_v51, %v4038_v59 }
0x13cd   : > { %v2228_v12 = vadd.f32 %v3972_v22, %v2227_v0  ;;  %3266 = vpow2.f32 %v2723_v9 }
0x13ce   : > { %v2975_v13 = vpop.f32.mrf.mxu0 }
0x13cf   : > { %2247 = vrot.lane.b32.xlu0 %v2228_v12, %s3370_s24  ;;  %v2724_v50 = vmul.f32 -1.442695, %v2228_v12  ;;  %v3265_v11 = vpop.eup %3264 }
0x13d0   : > { %v2371_v29 = vsub.f32 1.0, %v3265_v11  ;;  %v2383_v3 = vmul.f32 %v3265_v11, %v4040_v54 }
0x13d1   : > { %3268 = vpow2.f32 %v2724_v50 }
0x13da   : > { %v3267_v58 = vpop.eup %3266 }
0x13db   : > { %v2237_v43 = vadd.f32 1.0, %v3267_v58 }
0x13dd   : > { %3270 = vrcp.f32 %v2237_v43 }
0x13de   : > { %v3269_v63 = vpop.eup %3268 }
0x13df   : > { %v2238_v7 = vadd.f32 1.0, %v3269_v63 }
0x13e1   : > { %3272 = vrcp.f32 %v2238_v7 }
0x13ea   : > { %v3271_v55 = vpop.eup %3270 }
0x13eb   : > { %v2277_v13 = vmul.f32 %v3271_v55, %v4062_v41 }
0x13ee   : > { %v3273_v25 = vpop.eup %3272 }
0x13ef   : > { %v2266_v62 = vsub.f32 1.0, %v3273_v25 }
0x141e   : > { %v2351_v4 = vpop.permute.xlu1 %2350 }
0x141f   : > { %v2356_v10 = vmul.f32 %v3263_v51, %v2351_v4 }
0x1421   : > { %2360 = vrot.lane.b32.xlu1 %v2356_v10, %s3365_s27 }
0x1422   : > { %v2353_v56 = vpop.permute.xlu0 %2352 }
0x1423   : > { %v2357_v16 = vmul.f32 %v3265_v11, %v2353_v56 }
0x1425   : > { %2362 = vrot.lane.b32.xlu0 %v2357_v16, %s3365_s27 }
0x143d   : > { %v2246_v23 = vpop.permute.xlu1 %2245 }
0x143e   : > { %v2251_v24 = vmul.f32 %v3271_v55, %v2246_v23 }
0x1440   : > { %2255 = vrot.lane.b32.xlu1 %v2251_v24, %s3365_s27 }
0x1441   : > { %v2248_v36 = vpop.permute.xlu0 %2247 }
0x1442   : > { %v2252_v5 = vmul.f32 %v3273_v25, %v2248_v36  ;;  %v3100_v36 = vld [vmem:[%s4174_s7 + $0x8] sm:$0xff]  }
0x1443   : > { %2997 = vmatpush3.bf16.msra.mxu0 %v3100_v36 }
0x1444   : > { %2257 = vrot.lane.b32.xlu0 %v2252_v5, %s3365_s27  ;;  %2998 = vmatprep.subr.bf16.mxu0 %v3363_v17 }
0x1493   : > { %v2361_v19 = vpop.permute.xlu1 %2360 }
0x1494   : > { %v2366_v49 = vadd.f32 %v2361_v19, %v2282_v1  ;;  %v2278_v1 = vmul.f32 %v3273_v25, %v4064_v20  ;;  %v3101_v19 = vld [vmem:[%s4174_s7] sm:$0xff]  }
0x1495   : > { %2999 = vmatpush3.bf16.msra.mxu0 %v3101_v19 }
0x1496   : > { %3274 = vtanh.f32 %v2366_v49 }
0x1497   : > { %v2363_v14 = vpop.permute.xlu0 %2362 }
0x1498   : > { %v2367_v30 = vadd.f32 %v2363_v14, %v2283_v26 }
0x149a   : > { %3276 = vtanh.f32 %v2367_v30 }
0x14a3   : > { %v3275_v31 = vpop.eup %3274 }
0x14a4   : > { %2374 = vrot.lane.b32.xlu1 %v3275_v31, %s3369_s28 }
0x14a7   : > { %v3277_v38 = vpop.eup %3276 }
0x14a8   : > { %2376 = vrot.lane.b32.xlu0 %v3277_v38, %s3369_s28 }
0x14b2   : > { %v2256_v32 = vpop.permute.xlu1 %2255 }
0x14b3   : > { %v2261_v33 = vadd.f32 %v2256_v32, %v2225_v57  ;;  %v2265_v57 = vsub.f32 1.0, %v3271_v55 }
0x14b5   : > { %3278 = vtanh.f32 %v2261_v33 }
0x14b6   : > { %v2258_v21 = vpop.permute.xlu0 %2257 }
0x14b7   : > { %v2262_v35 = vadd.f32 %v2258_v21, %v2228_v12 }
0x14b9   : > { %3280 = vtanh.f32 %v2262_v35 }
0x14c2   : > { %v3279_v37 = vpop.eup %3278 }
0x14c3   : > { %2269 = vrot.lane.b32.xlu1 %v3279_v37, %s3369_s28 }
0x14c6   : > { %v3281_v39 = vpop.eup %3280 }
0x14c7   : > { %2271 = vrot.lane.b32.xlu0 %v3281_v39, %s3369_s28 }
0x1516   : > { %v2375_v40 = vpop.permute.xlu1 %2374 }
0x1517   : > { %v2380_v28 = vmul.f32 %v2375_v40, %v2370_v27  ;;  %v2731_v27 = vld [vmem:[%s4175_s8] ss:$0 sm:$0xff] }
0x1519   : > { %v2384_v45 = vadd.f32 %v2382_v44, %v2380_v28 }
0x151a   : > { %v2377_v34 = vpop.permute.xlu0 %2376 }
0x151b   : > { %v2381_v42 = vmul.f32 %v2377_v34, %v2371_v29 }
0x151d   : > { %v2385_v47 = vadd.f32 %v2383_v3, %v2381_v42 }
0x151f   : > { %v3089_v15 = vpack.i.bf16 %v2385_v47, %v2384_v45 }
0x1521   : > { %3090 = vrot.lane.b32.xlu1 %v3089_v15, %s3369_s28 }
0x1535   : > { %v2270_v52 = vpop.permute.xlu1 %2269 }
0x1536   : > { %v2275_v0 = vmul.f32 %v2270_v52, %v2265_v57 }
0x1538   : > { %v2279_v59 = vadd.f32 %v2277_v13, %v2275_v0 }
0x1539   : > { %v2272_v53 = vpop.permute.xlu0 %2271 }
0x153a   : > { %v2276_v12 = vmul.f32 %v2272_v53, %v2266_v62 }
0x153c   : > { %v2280_v26 = vadd.f32 %v2278_v1, %v2276_v12 }
0x1593   : > { %v3091_v18 = vpop.permute.xlu1 %3090 }
0x1594   : > { %v3093_v54 = vunpack.i.h.bf16 %v3091_v18  ;;  %v3092_v2 = vunpack.i.l.bf16 %v3091_v18 }
0x1596   : > { %v2394_v8 = vsel %vm789_vm4, %v3092_v2, %v2279_v59  ;;  %v2395_v46 = vsel %vm789_vm4, %v3093_v54, %v2280_v26 }
0x1597   : > { %v2396_v6 = vpack.c.bf16 %v2395_v46, %v2394_v8 }
0x1599   : > { %2993 = vmatmul.mubr.msk.bf16.vlgmr.msra.gmra.mxu1 %vm926_vm5, %v2396_v6 }
0x1659   : > { %v2434_v60 = vpop.f32.mrf.mxu1 }
0x165a   : > { %v2435_v48 = vadd.f32 %v3972_v22, %v2434_v60 }
0x165b   : > { %v2994_v61 = vpop.f32.mrf.mxu1 }
0x165c   : > { %2455 = vrot.lane.b32.xlu0 %v2435_v48, %s3370_s24  ;;  %v2729_v50 = vmul.f32 -1.442695, %v2435_v48 }
0x165d   : > { %v2437_v41 = vpop.f32.mrf.mxu1 }
0x165e   : > { %v2438_v20 = vadd.f32 %v3972_v22, %v2437_v41  ;;  %3282 = vpow2.f32 %v2729_v50 }
0x165f   : > { %v2995_v9 = vpop.f32.mrf.mxu1 }
0x1660   : > { %2457 = vrot.lane.b32.xlu1 %v2438_v20, %s3370_s24  ;;  %v2730_v51 = vmul.f32 -1.442695, %v2438_v20 }
0x1662   : > { %3284 = vpow2.f32 %v2730_v51 }
0x166b   : > { %v3283_v4 = vpop.eup %3282 }
0x166c   : > { %v2447_v10 = vadd.f32 1.0, %v3283_v4 }
0x166e   : > { %3286 = vrcp.f32 %v2447_v10 }
0x166f   : > { %v3285_v11 = vpop.eup %3284 }
0x1670   : > { %v2448_v56 = vadd.f32 1.0, %v3285_v11 }
0x1672   : > { %3288 = vrcp.f32 %v2448_v56 }
0x167b   : > { %v3287_v16 = vpop.eup %3286 }
0x167c   : > { %v2475_v30 = vsub.f32 1.0, %v3287_v16  ;;  %v2487_v33 = vmul.f32 %v3287_v16, %v2279_v59 }
0x167f   : > { %v3289_v63 = vpop.eup %3288 }
0x1680   : > { %v2476_v38 = vsub.f32 1.0, %v3289_v63  ;;  %v2488_v21 = vmul.f32 %v3289_v63, %v2280_v26 }
0x16ce   : > { %v2456_v58 = vpop.permute.xlu0 %2455 }
0x16cf   : > { %v2461_v43 = vmul.f32 %v3287_v16, %v2456_v58 }
0x16d1   : > { %2465 = vrot.lane.b32.xlu0 %v2461_v43, %s3365_s27 }
0x16d2   : > { %v2458_v22 = vpop.permute.xlu1 %2457 }
0x16d3   : > { %v2462_v7 = vmul.f32 %v3289_v63, %v2458_v22 }
0x16d5   : > { %2467 = vrot.lane.b32.xlu1 %v2462_v7, %s3365_s27  ;;  %s2666_s27 = sshll.u32 %s3509_s17, 4 }
0x16d6   : > { %s439_s14 = scalar_lea.vmem [#allocation4], %s2666_s27  ;;  %s3305_s27 = sshll.u32 %s3371_s13, 4  ;;  %s3306_s27 = int_to_ptr.vmem [resolvable:$false] %s3305_s27 }
0x16d7   : > { %s2578_s16 = sshll.u32 %s439_s14, 4  ;;  %s3307_s25 = scalar_lea.vmem %s3306_s27, 512  ;;  %s4119_s16 = int_to_ptr.vmem [resolvable:$true] %s2578_s16 }
0x16d8   : > { %s3301_s26 = scalar_lea.vmem %s4119_s16, 256  ;;  %p3308_p3 = scmp.lt.s32.totalorder %s4119_s16, %s3306_s27 }
0x16d9   : > { %p3302_p0 = scmp.ne.s32.totalorder %s4119_s16, %s3301_s26  ;;  %p3309_p4 = scmp.lt.s32.totalorder %s3307_s25, %s3301_s26 }
0x16db   : > { %p3303_p1 = pnand %p3302_p0, %p3463_p6  ;;  %p3310_p5 = por %p3309_p4, %p3308_p3 }
0x16dd   : > { %p3304_p2 = pneg %p3303_p1 }
0x16df   : > { %p3311_p7 = pnand %p3310_p5, %p3304_p2 }
0x1743   : > { %v2466_v55 = vpop.permute.xlu0 %2465 }
0x1744   : > { %v2471_v23 = vadd.f32 %v2466_v55, %v2435_v48 }
0x1746   : > { %3290 = vtanh.f32 %v2471_v23 }
0x1747   : > { %v2468_v24 = vpop.permute.xlu1 %2467 }
0x1748   : > { %v2472_v25 = vadd.f32 %v2468_v24, %v2438_v20 }
0x174a   : > { %3292 = vtanh.f32 %v2472_v25 }
0x1753   : > { %v3291_v5 = vpop.eup %3290 }
0x1754   : > { %2479 = vrot.lane.b32.xlu0 %v3291_v5, %s3369_s28 }
0x1757   : > { %v3293_v49 = vpop.eup %3292 }
0x1758   : > { %2481 = vrot.lane.b32.xlu1 %v3293_v49, %s3369_s28 }
0x17c6   : > { %v2480_v14 = vpop.permute.xlu0 %2479 }
0x17c7   : > { %v2485_v31 = vmul.f32 %v2480_v14, %v2475_v30 }
0x17c9   : > { %v2489_v37 = vadd.f32 %v2487_v33, %v2485_v31 }
0x17ca   : > { %v2482_v32 = vpop.permute.xlu1 %2481 }
0x17cb   : > { %v2486_v35 = vmul.f32 %v2482_v32, %v2476_v38 }
0x17cd   : > { %v2490_v39 = vadd.f32 %v2488_v21, %v2486_v35 }
0x17cf   : > { %v2491_v40 = vpack.c.bf16 %v2490_v39, %v2489_v37 }
0x17d1   : > { %2504 = vrot.lane.b32.xlu0 %v2491_v40, %s3369_s28 }
0x1843   : > { %v2505_v17 = vpop.permute.xlu0 %2504 }
0x1844   : > { %3001 = vmatmul.mubr.msk.bf16.vlgmr.msra.gmra.mxu0 %vm789_vm4, %v2505_v17 }
0x1904   : > { %v2555_v28 = vpop.f32.mrf.mxu0 }
0x1905   : > { %v2556_v29 = vadd.f32 %v2731_v27, %v2555_v28 }
0x1906   : > { %v3002_v34 = vpop.f32.mrf.mxu0 }
0x1907   : > { %2562 = vst [vmem:[%s439_s14] sm:$0xff] %v2556_v29 }
0x1908   : > { %v2558_v44 = vpop.f32.mrf.mxu0 }
0x1909   : > { %v2559_v3 = vadd.f32 %v2731_v27, %v2558_v44 }
0x190a   : > { %v3003_v42 = vpop.f32.mrf.mxu0 }
0x190b   : > { %2563 = vst [vmem:[%s439_s14 + $0x8] sm:$0xff] %v2559_v3 }
0x190c   : > { %3314 = shalt.err (!%p3311_p7)
}
0x190d   : > { %s3315_s29 = scalar_lea.hbm %s4124_s22, 256  ;;  %s3319_s28 = scalar_lea.hbm %s4176_s9, 512 }
0x190e   : > { %p3316_p10 = scmp.ne.s32.totalorder %s4124_s22, %s3315_s29  ;;  %p3320_p13 = scmp.lt.s32.totalorder %s4124_s22, %s4176_s9 }
0x190f   : > { %p3321_p0 = scmp.lt.s32.totalorder %s3319_s28, %s3315_s29 }
0x1910   : > { %p3317_p11 = pnand %p3316_p10, %p3463_p6 }
0x1911   : > { %p3322_p1 = por %p3321_p0, %p3320_p13 }
0x1912   : > { %p3318_p12 = pneg %p3317_p11 }
0x1914   : > { %p3323_p2 = pnand %p3322_p1, %p3318_p12 }
0x1916   : > { %3326 = shalt.err (!%p3323_p2)
}
0x1917   : > { %s3372_s26 = smov 128   ;;  %s3373_s27 = smov 8  }
0x1918   : > { %3005 = dma.vmem_to_hbm [thread:$0]  (%p3463_p6), %s4119_s16, 256, %s4124_s22, %s2565_s23, %s3372_s26, %s3372_s26, %s3373_s27  }
0x1919 PF: > { %s2593_s25 = sand.u32 1, %s3349_s30   ;;  %p3008_p3 = pnand %p2660_p9, %p3467_p8 }
0x191a   : > { %s2594_s29 = scalar_lea.sflag [#allocation5], %s2593_s25 }
0x191b   : > { %p3009_p4 = pneg %p3008_p3 }
0x191d   : > { %3344 = dma.done.wait (%p3009_p4), %s2594_s29, 256  }
0x191e   : > { %3346 = vsyncadd (%p3009_p4), %s2594_s29, 4294967040  ;;  %p19_p5 = scmp.ge.s32.totalorder %s3449_s15, 4   ;;  %s4179_s30 = smov %s3353_s10 }
0x191f   : > { %s4180_s10 = smov %s3357_s11  ;;  %s4181_s11 = smov %s3461_s18 }
0x1920   : > { %s4182_s12 = smov %s3449_s15  ;;  %21 = sbr.rel (!%p19_p5) target bundleno = 3 (0x3), region = 144 }
0x1925   :  { %2599 = vsyncpa [#allocation5], 1 }
0x1926   :  { %2601 = vsyncpa [#allocation5 + $0x1], 1 }

</bundles_post_ra>
